<compile_context>
chip_gen: v7x
topology: tpu7x:2x2x1
jax: 0.10.0
libtpu: 0.0.40
codegen_flags: <defaults>
</compile_context>

<pallas_src>
import functools
import math

import jax
import jax.numpy as jnp
from jax.experimental import pallas as pl
from jax.experimental.pallas import tpu as pltpu


# ----------------------------------------------------------------------------
# Fused kernel: all GRU layers + fc in one invocation (no grid, no scratch).
# ----------------------------------------------------------------------------
def _net_fused_kernel(num_layers, hid_state, B, T, H, *refs):
    # refs layout:
    #   [0]                        x2d             (B*T, in_D)
    #   [1 + 4*l .. 4 + 4*l]       w_ih_cat (D,3H), w_hh_cat (H,3H),
    #                              b_fold (1,3H),   b_hh_n (1,H)
    #   [1 + 4*L]                  fc_w            (H, out_D)
    #   [2 + 4*L]                  fc_b            (1, out_D)
    #   [3 + 4*L]                  out_ref
    fc_w_ref = refs[1 + 4 * num_layers]
    fc_b_ref = refs[2 + 4 * num_layers]
    out_ref = refs[3 + 4 * num_layers]

    cur = refs[0][...].astype(jnp.float32)            # (B*T, D) layer input

    h_last = None
    for layer in range(num_layers):
        w_ih = refs[1 + 4 * layer][...]               # (D, 3H)   [r|z|n]
        w_hh = refs[2 + 4 * layer][...]               # (H, 3H)   [r|z|n]
        b_fold = refs[3 + 4 * layer][...]             # (1, 3H)   ih + (hh for r,z)
        b_hh_n = refs[4 + 4 * layer][...]             # (1, H)

        # ---- hoisted input projection: ONE MXU matmul per layer, all gates,
        #      with the r/z recurrent biases already folded in. ---------------
        gi = (jnp.dot(cur, w_ih, preferred_element_type=jnp.float32)
              + b_fold).reshape(B, T, 3 * H)

        # Pre-broadcast once (JAX does not CSE broadcast_in_dim in a loop).
        bhn = jnp.broadcast_to(b_hh_n, (B, H))

        # Only keep the full sequence if something consumes it.
        need_seq = (layer < num_layers - 1) or (not hid_state)

        h = jnp.zeros((B, H), jnp.float32)
        hs = []
        # ---- recurrence: statically unrolled time loop (T small) -----------
        for t in range(T):
            gh = jnp.dot(h, w_hh, preferred_element_type=jnp.float32)  # (B,3H)
            # r|z fused sigmoid (one EUP call), n via tanh.
            rz = jax.nn.sigmoid(gi[:, t, :2 * H] + gh[:, :2 * H])
            r = rz[:, :H]
            z = rz[:, H:]
            n = jnp.tanh(gi[:, t, 2 * H:] + r * (gh[:, 2 * H:] + bhn))
            h = n + z * (h - n)                       # == (1-z)*n + z*h
            if need_seq:
                hs.append(h)
        h_last = h
        if need_seq:
            # vreg-resident sequence (B*T*H f32 ~ 2 KB): no VMEM scratch,
            # no masked sublane stores, no store->load dependency.
            cur = jnp.stack(hs, axis=1).reshape(B * T, H)
        # TODO(synk): nn.GRU dropout=0.5 between layers is train-only; omitted.

    # ---- fused Linear epilogue ---------------------------------------------
    src = h_last if hid_state else cur
    pred = (jnp.dot(src, fc_w_ref[...], preferred_element_type=jnp.float32)
            + fc_b_ref[...])
    out_ref[...] = pred.astype(out_ref.dtype)


# ----------------------------------------------------------------------------
# Wrapper: single pallas_call for the whole Net forward (everything in VMEM).
# ----------------------------------------------------------------------------
def net_forward(x_btd, packed, hid_state):
    """x_btd: (B, T, in_D) batch-first. Returns fc(h_out[-1]) if hid_state
    else fc(out), matching the PyTorch module (eval semantics)."""
    B, T, in_D = x_btd.shape
    num_layers = len(packed["gru"])
    H = packed["gru"][0]["w_hh_cat"].shape[0]
    out_D = packed["fc_w_t"].shape[-1]

    inputs = [x_btd.reshape(B * T, in_D)]             # free contiguous reshape
    for layer in packed["gru"]:
        inputs += [layer["w_ih_cat"], layer["w_hh_cat"],
                   layer["b_fold"], layer["b_hh_n"]]
    inputs += [packed["fc_w_t"], packed["fc_b"]]

    out_rows = B if hid_state else B * T
    kernel = functools.partial(_net_fused_kernel, num_layers, hid_state, B, T, H)
    pred = pl.pallas_call(
        kernel,
        out_shape=jax.ShapeDtypeStruct((out_rows, out_D), x_btd.dtype),
        in_specs=[pl.BlockSpec(memory_space=pltpu.MemorySpace.VMEM)
                  for _ in inputs],
        out_specs=pl.BlockSpec(memory_space=pltpu.MemorySpace.VMEM),
    )(*inputs)
    return pred if hid_state else pred.reshape(B, T, out_D)


# ----------------------------------------------------------------------------
# Deterministic parameter init (PyTorch-style uniform(-1/sqrt(hid), 1/sqrt(hid)))
# Per-gate layout (used by the pure-JAX reference): w_ih (3, D, H),
# w_hh (3, H, H), biases (3, 1, H). Gate order: r, z, n.
# ----------------------------------------------------------------------------
def init_params(key, in_D, hid, out_D, num_layers):
    k = 1.0 / math.sqrt(hid)
    params = {"gru": []}
    for layer in range(num_layers):
        d_in = in_D if layer == 0 else hid
        key, k1, k2, k3, k4 = jax.random.split(key, 5)
        params["gru"].append({
            "w_ih": jax.random.uniform(k1, (3, d_in, hid), jnp.float32, -k, k),
            "w_hh": jax.random.uniform(k2, (3, hid, hid), jnp.float32, -k, k),
            "b_ih": jax.random.uniform(k3, (3, 1, hid), jnp.float32, -k, k),
            "b_hh": jax.random.uniform(k4, (3, 1, hid), jnp.float32, -k, k),
        })
    key, k5, k6 = jax.random.split(key, 3)
    params["fc_w_t"] = jax.random.uniform(k5, (hid, out_D), jnp.float32, -k, k)
    params["fc_b"] = jax.random.uniform(k6, (1, out_D), jnp.float32, -k, k)
    return params


# Kernel-side layout: gates concatenated along lanes, r/z recurrent biases
# folded into the hoisted projection bias (one-time packing).
def pack_params(params):
    packed = {"gru": []}
    for layer in params["gru"]:
        w_ih, w_hh = layer["w_ih"], layer["w_hh"]
        b_ih, b_hh = layer["b_ih"], layer["b_hh"]
        packed["gru"].append({
            "w_ih_cat": jnp.concatenate([w_ih[0], w_ih[1], w_ih[2]], axis=1),
            "w_hh_cat": jnp.concatenate([w_hh[0], w_hh[1], w_hh[2]], axis=1),
            "b_fold": jnp.concatenate([b_ih[0] + b_hh[0],
                                       b_ih[1] + b_hh[1],
                                       b_ih[2]], axis=1),
            "b_hh_n": b_hh[2],
        })
    packed["fc_w_t"] = params["fc_w_t"]
    packed["fc_b"] = params["fc_b"]
    return packed


# ----------------------------------------------------------------------------
# Pure-JAX reference (for correctness checking), faithful to PyTorch nn.GRU.
# ----------------------------------------------------------------------------
def net_forward_ref(x_btd, params, hid_state):
    B, T, _ = x_btd.shape
    x = x_btd
    h_last = None
    for layer in params["gru"]:
        w_ih, w_hh = layer["w_ih"], layer["w_hh"]
        b_ih, b_hh = layer["b_ih"], layer["b_hh"]
        H = w_hh.shape[-1]
        h = jnp.zeros((B, H), jnp.float32)
        outs = []
        for t in range(T):
            xt = x[:, t, :]
            i_r = xt @ w_ih[0] + b_ih[0]
            i_z = xt @ w_ih[1] + b_ih[1]
            i_n = xt @ w_ih[2] + b_ih[2]
            h_r = h @ w_hh[0] + b_hh[0]
            h_z = h @ w_hh[1] + b_hh[1]
            h_n = h @ w_hh[2] + b_hh[2]
            r = jax.nn.sigmoid(i_r + h_r)
            z = jax.nn.sigmoid(i_z + h_z)
            n = jnp.tanh(i_n + r * h_n)
            h = (1.0 - z) * n + z * h
            outs.append(h)
        x = jnp.stack(outs, axis=1)
        h_last = h
    if hid_state:
        return h_last @ params["fc_w_t"] + params["fc_b"]
    return x @ params["fc_w_t"] + params["fc_b"][0]


if __name__ == "__main__":
    # Small shapes consistent with the module's forward:
    B, T, in_D, hid, out_D, num_layers = 2, 8, 4, 32, 3, 2

    key = jax.random.PRNGKey(0)
    key, xk, pk = jax.random.split(key, 3)
    x = jax.random.normal(xk, (B, T, in_D), jnp.float32)
    params = init_params(pk, in_D, hid, out_D, num_layers)
    packed = pack_params(params)

    ok = True
    for hid_state in (False, True):
        pred = net_forward(x, packed, hid_state)
        pred = jax.block_until_ready(pred)
        ref = net_forward_ref(x, params, hid_state)
        if not bool(jnp.allclose(pred, ref, atol=1e-5, rtol=1e-5)):
            ok = False
            print("MISMATCH hid_state=", hid_state,
                  float(jnp.max(jnp.abs(pred - ref))))

    if ok:
        print("KERNEL_OK")
</pallas_src>

<mosaic_0001>
module attributes {stable_mosaic.version = 11 : i64} {
  func.func @_net_fused_kernel(%arg0: memref<16x4xf32, #tpu.memory_space<vmem>>, %arg1: memref<4x96xf32, #tpu.memory_space<vmem>>, %arg2: memref<32x96xf32, #tpu.memory_space<vmem>>, %arg3: memref<1x96xf32, #tpu.memory_space<vmem>>, %arg4: memref<1x32xf32, #tpu.memory_space<vmem>>, %arg5: memref<32x96xf32, #tpu.memory_space<vmem>>, %arg6: memref<32x96xf32, #tpu.memory_space<vmem>>, %arg7: memref<1x96xf32, #tpu.memory_space<vmem>>, %arg8: memref<1x32xf32, #tpu.memory_space<vmem>>, %arg9: memref<32x3xf32, #tpu.memory_space<vmem>>, %arg10: memref<1x3xf32, #tpu.memory_space<vmem>>, %arg11: memref<16x3xf32, #tpu.memory_space<vmem>>) attributes {dimension_semantics = [], scalar_prefetch = 0 : i64, scratch_operands = 0 : i64, tpu.core_type = #tpu.core_type<tc>} {
    %c0 = arith.constant 0 : index
    %c0_0 = arith.constant 0 : index
    %0 = vector.load %arg0[%c0, %c0_0] : memref<16x4xf32, #tpu.memory_space<vmem>>, vector<16x4xf32>
    %c0_1 = arith.constant 0 : index
    %c0_2 = arith.constant 0 : index
    %1 = vector.load %arg1[%c0_1, %c0_2] : memref<4x96xf32, #tpu.memory_space<vmem>>, vector<4x96xf32>
    %c0_3 = arith.constant 0 : index
    %c0_4 = arith.constant 0 : index
    %2 = vector.load %arg2[%c0_3, %c0_4] : memref<32x96xf32, #tpu.memory_space<vmem>>, vector<32x96xf32>
    %c0_5 = arith.constant 0 : index
    %c0_6 = arith.constant 0 : index
    %3 = vector.load %arg3[%c0_5, %c0_6] : memref<1x96xf32, #tpu.memory_space<vmem>>, vector<1x96xf32>
    %c0_7 = arith.constant 0 : index
    %c0_8 = arith.constant 0 : index
    %4 = vector.load %arg4[%c0_7, %c0_8] : memref<1x32xf32, #tpu.memory_space<vmem>>, vector<1x32xf32>
    %cst = arith.constant dense<0.000000e+00> : vector<16x96xf32>
    %5 = tpu.matmul %0, %1, %cst {dimension_numbers = #tpu.dot_dimension_numbers<[1], [0], [0], [1], [0, 0, 1, 1], [], []>} : vector<16x4xf32>, vector<4x96xf32>, vector<16x96xf32> -> vector<16x96xf32>
    %6 = vector.broadcast %3 : vector<1x96xf32> to vector<16x96xf32>
    %7 = arith.addf %5, %6 : vector<16x96xf32>
    %8 = vector.shape_cast %7 : vector<16x96xf32> to vector<2x8x96xf32>
    %9 = vector.shape_cast %4 : vector<1x32xf32> to vector<1x32xf32>
    %10 = vector.broadcast %9 : vector<1x32xf32> to vector<2x32xf32>
    %cst_9 = arith.constant 0.000000e+00 : f32
    %11 = vector.broadcast %cst_9 : f32 to vector<2x32xf32>
    %cst_10 = arith.constant dense<0.000000e+00> : vector<2x96xf32>
    %12 = tpu.matmul %11, %2, %cst_10 {dimension_numbers = #tpu.dot_dimension_numbers<[1], [0], [0], [1], [0, 0, 1, 1], [], []>} : vector<2x32xf32>, vector<32x96xf32>, vector<2x96xf32> -> vector<2x96xf32>
    %13 = vector.extract_strided_slice %8 {offsets = [0, 0, 0], sizes = [2, 1, 64], strides = [1, 1, 1]} : vector<2x8x96xf32> to vector<2x1x64xf32>
    %14 = vector.shape_cast %13 : vector<2x1x64xf32> to vector<2x64xf32>
    %15 = vector.extract_strided_slice %12 {offsets = [0, 0], sizes = [2, 64], strides = [1, 1]} : vector<2x96xf32> to vector<2x64xf32>
    %16 = arith.addf %14, %15 : vector<2x64xf32>
    %17 = arith.negf %16 : vector<2x64xf32>
    %18 = math.exp %17 : vector<2x64xf32>
    %cst_11 = arith.constant 1.000000e+00 : f32
    %19 = vector.broadcast %cst_11 : f32 to vector<2x64xf32>
    %20 = arith.addf %19, %18 : vector<2x64xf32>
    %21 = arith.divf %19, %20 : vector<2x64xf32>
    %22 = vector.extract_strided_slice %21 {offsets = [0, 0], sizes = [2, 32], strides = [1, 1]} : vector<2x64xf32> to vector<2x32xf32>
    %23 = vector.extract_strided_slice %21 {offsets = [0, 32], sizes = [2, 32], strides = [1, 1]} : vector<2x64xf32> to vector<2x32xf32>
    %24 = vector.extract_strided_slice %8 {offsets = [0, 0, 64], sizes = [2, 1, 32], strides = [1, 1, 1]} : vector<2x8x96xf32> to vector<2x1x32xf32>
    %25 = vector.shape_cast %24 : vector<2x1x32xf32> to vector<2x32xf32>
    %26 = vector.extract_strided_slice %12 {offsets = [0, 64], sizes = [2, 32], strides = [1, 1]} : vector<2x96xf32> to vector<2x32xf32>
    %27 = arith.addf %26, %10 : vector<2x32xf32>
    %28 = arith.mulf %22, %27 : vector<2x32xf32>
    %29 = arith.addf %25, %28 : vector<2x32xf32>
    %30 = math.tanh %29 : vector<2x32xf32>
    %31 = arith.subf %11, %30 : vector<2x32xf32>
    %32 = arith.mulf %23, %31 : vector<2x32xf32>
    %33 = arith.addf %30, %32 : vector<2x32xf32>
    %cst_12 = arith.constant dense<0.000000e+00> : vector<2x96xf32>
    %34 = tpu.matmul %33, %2, %cst_12 {dimension_numbers = #tpu.dot_dimension_numbers<[1], [0], [0], [1], [0, 0, 1, 1], [], []>} : vector<2x32xf32>, vector<32x96xf32>, vector<2x96xf32> -> vector<2x96xf32>
    %35 = vector.extract_strided_slice %8 {offsets = [0, 1, 0], sizes = [2, 1, 64], strides = [1, 1, 1]} : vector<2x8x96xf32> to vector<2x1x64xf32>
    %36 = vector.shape_cast %35 : vector<2x1x64xf32> to vector<2x64xf32>
    %37 = vector.extract_strided_slice %34 {offsets = [0, 0], sizes = [2, 64], strides = [1, 1]} : vector<2x96xf32> to vector<2x64xf32>
    %38 = arith.addf %36, %37 : vector<2x64xf32>
    %39 = arith.negf %38 : vector<2x64xf32>
    %40 = math.exp %39 : vector<2x64xf32>
    %cst_13 = arith.constant 1.000000e+00 : f32
    %41 = vector.broadcast %cst_13 : f32 to vector<2x64xf32>
    %42 = arith.addf %41, %40 : vector<2x64xf32>
    %43 = arith.divf %41, %42 : vector<2x64xf32>
    %44 = vector.extract_strided_slice %43 {offsets = [0, 0], sizes = [2, 32], strides = [1, 1]} : vector<2x64xf32> to vector<2x32xf32>
    %45 = vector.extract_strided_slice %43 {offsets = [0, 32], sizes = [2, 32], strides = [1, 1]} : vector<2x64xf32> to vector<2x32xf32>
    %46 = vector.extract_strided_slice %8 {offsets = [0, 1, 64], sizes = [2, 1, 32], strides = [1, 1, 1]} : vector<2x8x96xf32> to vector<2x1x32xf32>
    %47 = vector.shape_cast %46 : vector<2x1x32xf32> to vector<2x32xf32>
    %48 = vector.extract_strided_slice %34 {offsets = [0, 64], sizes = [2, 32], strides = [1, 1]} : vector<2x96xf32> to vector<2x32xf32>
    %49 = arith.addf %48, %10 : vector<2x32xf32>
    %50 = arith.mulf %44, %49 : vector<2x32xf32>
    %51 = arith.addf %47, %50 : vector<2x32xf32>
    %52 = math.tanh %51 : vector<2x32xf32>
    %53 = arith.subf %33, %52 : vector<2x32xf32>
    %54 = arith.mulf %45, %53 : vector<2x32xf32>
    %55 = arith.addf %52, %54 : vector<2x32xf32>
    %cst_14 = arith.constant dense<0.000000e+00> : vector<2x96xf32>
    %56 = tpu.matmul %55, %2, %cst_14 {dimension_numbers = #tpu.dot_dimension_numbers<[1], [0], [0], [1], [0, 0, 1, 1], [], []>} : vector<2x32xf32>, vector<32x96xf32>, vector<2x96xf32> -> vector<2x96xf32>
    %57 = vector.extract_strided_slice %8 {offsets = [0, 2, 0], sizes = [2, 1, 64], strides = [1, 1, 1]} : vector<2x8x96xf32> to vector<2x1x64xf32>
    %58 = vector.shape_cast %57 : vector<2x1x64xf32> to vector<2x64xf32>
    %59 = vector.extract_strided_slice %56 {offsets = [0, 0], sizes = [2, 64], strides = [1, 1]} : vector<2x96xf32> to vector<2x64xf32>
    %60 = arith.addf %58, %59 : vector<2x64xf32>
    %61 = arith.negf %60 : vector<2x64xf32>
    %62 = math.exp %61 : vector<2x64xf32>
    %cst_15 = arith.constant 1.000000e+00 : f32
    %63 = vector.broadcast %cst_15 : f32 to vector<2x64xf32>
    %64 = arith.addf %63, %62 : vector<2x64xf32>
    %65 = arith.divf %63, %64 : vector<2x64xf32>
    %66 = vector.extract_strided_slice %65 {offsets = [0, 0], sizes = [2, 32], strides = [1, 1]} : vector<2x64xf32> to vector<2x32xf32>
    %67 = vector.extract_strided_slice %65 {offsets = [0, 32], sizes = [2, 32], strides = [1, 1]} : vector<2x64xf32> to vector<2x32xf32>
    %68 = vector.extract_strided_slice %8 {offsets = [0, 2, 64], sizes = [2, 1, 32], strides = [1, 1, 1]} : vector<2x8x96xf32> to vector<2x1x32xf32>
    %69 = vector.shape_cast %68 : vector<2x1x32xf32> to vector<2x32xf32>
    %70 = vector.extract_strided_slice %56 {offsets = [0, 64], sizes = [2, 32], strides = [1, 1]} : vector<2x96xf32> to vector<2x32xf32>
    %71 = arith.addf %70, %10 : vector<2x32xf32>
    %72 = arith.mulf %66, %71 : vector<2x32xf32>
    %73 = arith.addf %69, %72 : vector<2x32xf32>
    %74 = math.tanh %73 : vector<2x32xf32>
    %75 = arith.subf %55, %74 : vector<2x32xf32>
    %76 = arith.mulf %67, %75 : vector<2x32xf32>
    %77 = arith.addf %74, %76 : vector<2x32xf32>
    %cst_16 = arith.constant dense<0.000000e+00> : vector<2x96xf32>
    %78 = tpu.matmul %77, %2, %cst_16 {dimension_numbers = #tpu.dot_dimension_numbers<[1], [0], [0], [1], [0, 0, 1, 1], [], []>} : vector<2x32xf32>, vector<32x96xf32>, vector<2x96xf32> -> vector<2x96xf32>
    %79 = vector.extract_strided_slice %8 {offsets = [0, 3, 0], sizes = [2, 1, 64], strides = [1, 1, 1]} : vector<2x8x96xf32> to vector<2x1x64xf32>
    %80 = vector.shape_cast %79 : vector<2x1x64xf32> to vector<2x64xf32>
    %81 = vector.extract_strided_slice %78 {offsets = [0, 0], sizes = [2, 64], strides = [1, 1]} : vector<2x96xf32> to vector<2x64xf32>
    %82 = arith.addf %80, %81 : vector<2x64xf32>
    %83 = arith.negf %82 : vector<2x64xf32>
    %84 = math.exp %83 : vector<2x64xf32>
    %cst_17 = arith.constant 1.000000e+00 : f32
    %85 = vector.broadcast %cst_17 : f32 to vector<2x64xf32>
    %86 = arith.addf %85, %84 : vector<2x64xf32>
    %87 = arith.divf %85, %86 : vector<2x64xf32>
    %88 = vector.extract_strided_slice %87 {offsets = [0, 0], sizes = [2, 32], strides = [1, 1]} : vector<2x64xf32> to vector<2x32xf32>
    %89 = vector.extract_strided_slice %87 {offsets = [0, 32], sizes = [2, 32], strides = [1, 1]} : vector<2x64xf32> to vector<2x32xf32>
    %90 = vector.extract_strided_slice %8 {offsets = [0, 3, 64], sizes = [2, 1, 32], strides = [1, 1, 1]} : vector<2x8x96xf32> to vector<2x1x32xf32>
    %91 = vector.shape_cast %90 : vector<2x1x32xf32> to vector<2x32xf32>
    %92 = vector.extract_strided_slice %78 {offsets = [0, 64], sizes = [2, 32], strides = [1, 1]} : vector<2x96xf32> to vector<2x32xf32>
    %93 = arith.addf %92, %10 : vector<2x32xf32>
    %94 = arith.mulf %88, %93 : vector<2x32xf32>
    %95 = arith.addf %91, %94 : vector<2x32xf32>
    %96 = math.tanh %95 : vector<2x32xf32>
    %97 = arith.subf %77, %96 : vector<2x32xf32>
    %98 = arith.mulf %89, %97 : vector<2x32xf32>
    %99 = arith.addf %96, %98 : vector<2x32xf32>
    %cst_18 = arith.constant dense<0.000000e+00> : vector<2x96xf32>
    %100 = tpu.matmul %99, %2, %cst_18 {dimension_numbers = #tpu.dot_dimension_numbers<[1], [0], [0], [1], [0, 0, 1, 1], [], []>} : vector<2x32xf32>, vector<32x96xf32>, vector<2x96xf32> -> vector<2x96xf32>
    %101 = vector.extract_strided_slice %8 {offsets = [0, 4, 0], sizes = [2, 1, 64], strides = [1, 1, 1]} : vector<2x8x96xf32> to vector<2x1x64xf32>
    %102 = vector.shape_cast %101 : vector<2x1x64xf32> to vector<2x64xf32>
    %103 = vector.extract_strided_slice %100 {offsets = [0, 0], sizes = [2, 64], strides = [1, 1]} : vector<2x96xf32> to vector<2x64xf32>
    %104 = arith.addf %102, %103 : vector<2x64xf32>
    %105 = arith.negf %104 : vector<2x64xf32>
    %106 = math.exp %105 : vector<2x64xf32>
    %cst_19 = arith.constant 1.000000e+00 : f32
    %107 = vector.broadcast %cst_19 : f32 to vector<2x64xf32>
    %108 = arith.addf %107, %106 : vector<2x64xf32>
    %109 = arith.divf %107, %108 : vector<2x64xf32>
    %110 = vector.extract_strided_slice %109 {offsets = [0, 0], sizes = [2, 32], strides = [1, 1]} : vector<2x64xf32> to vector<2x32xf32>
    %111 = vector.extract_strided_slice %109 {offsets = [0, 32], sizes = [2, 32], strides = [1, 1]} : vector<2x64xf32> to vector<2x32xf32>
    %112 = vector.extract_strided_slice %8 {offsets = [0, 4, 64], sizes = [2, 1, 32], strides = [1, 1, 1]} : vector<2x8x96xf32> to vector<2x1x32xf32>
    %113 = vector.shape_cast %112 : vector<2x1x32xf32> to vector<2x32xf32>
    %114 = vector.extract_strided_slice %100 {offsets = [0, 64], sizes = [2, 32], strides = [1, 1]} : vector<2x96xf32> to vector<2x32xf32>
    %115 = arith.addf %114, %10 : vector<2x32xf32>
    %116 = arith.mulf %110, %115 : vector<2x32xf32>
    %117 = arith.addf %113, %116 : vector<2x32xf32>
    %118 = math.tanh %117 : vector<2x32xf32>
    %119 = arith.subf %99, %118 : vector<2x32xf32>
    %120 = arith.mulf %111, %119 : vector<2x32xf32>
    %121 = arith.addf %118, %120 : vector<2x32xf32>
    %cst_20 = arith.constant dense<0.000000e+00> : vector<2x96xf32>
    %122 = tpu.matmul %121, %2, %cst_20 {dimension_numbers = #tpu.dot_dimension_numbers<[1], [0], [0], [1], [0, 0, 1, 1], [], []>} : vector<2x32xf32>, vector<32x96xf32>, vector<2x96xf32> -> vector<2x96xf32>
    %123 = vector.extract_strided_slice %8 {offsets = [0, 5, 0], sizes = [2, 1, 64], strides = [1, 1, 1]} : vector<2x8x96xf32> to vector<2x1x64xf32>
    %124 = vector.shape_cast %123 : vector<2x1x64xf32> to vector<2x64xf32>
    %125 = vector.extract_strided_slice %122 {offsets = [0, 0], sizes = [2, 64], strides = [1, 1]} : vector<2x96xf32> to vector<2x64xf32>
    %126 = arith.addf %124, %125 : vector<2x64xf32>
    %127 = arith.negf %126 : vector<2x64xf32>
    %128 = math.exp %127 : vector<2x64xf32>
    %cst_21 = arith.constant 1.000000e+00 : f32
    %129 = vector.broadcast %cst_21 : f32 to vector<2x64xf32>
    %130 = arith.addf %129, %128 : vector<2x64xf32>
    %131 = arith.divf %129, %130 : vector<2x64xf32>
    %132 = vector.extract_strided_slice %131 {offsets = [0, 0], sizes = [2, 32], strides = [1, 1]} : vector<2x64xf32> to vector<2x32xf32>
    %133 = vector.extract_strided_slice %131 {offsets = [0, 32], sizes = [2, 32], strides = [1, 1]} : vector<2x64xf32> to vector<2x32xf32>
    %134 = vector.extract_strided_slice %8 {offsets = [0, 5, 64], sizes = [2, 1, 32], strides = [1, 1, 1]} : vector<2x8x96xf32> to vector<2x1x32xf32>
    %135 = vector.shape_cast %134 : vector<2x1x32xf32> to vector<2x32xf32>
    %136 = vector.extract_strided_slice %122 {offsets = [0, 64], sizes = [2, 32], strides = [1, 1]} : vector<2x96xf32> to vector<2x32xf32>
    %137 = arith.addf %136, %10 : vector<2x32xf32>
    %138 = arith.mulf %132, %137 : vector<2x32xf32>
    %139 = arith.addf %135, %138 : vector<2x32xf32>
    %140 = math.tanh %139 : vector<2x32xf32>
    %141 = arith.subf %121, %140 : vector<2x32xf32>
    %142 = arith.mulf %133, %141 : vector<2x32xf32>
    %143 = arith.addf %140, %142 : vector<2x32xf32>
    %cst_22 = arith.constant dense<0.000000e+00> : vector<2x96xf32>
    %144 = tpu.matmul %143, %2, %cst_22 {dimension_numbers = #tpu.dot_dimension_numbers<[1], [0], [0], [1], [0, 0, 1, 1], [], []>} : vector<2x32xf32>, vector<32x96xf32>, vector<2x96xf32> -> vector<2x96xf32>
    %145 = vector.extract_strided_slice %8 {offsets = [0, 6, 0], sizes = [2, 1, 64], strides = [1, 1, 1]} : vector<2x8x96xf32> to vector<2x1x64xf32>
    %146 = vector.shape_cast %145 : vector<2x1x64xf32> to vector<2x64xf32>
    %147 = vector.extract_strided_slice %144 {offsets = [0, 0], sizes = [2, 64], strides = [1, 1]} : vector<2x96xf32> to vector<2x64xf32>
    %148 = arith.addf %146, %147 : vector<2x64xf32>
    %149 = arith.negf %148 : vector<2x64xf32>
    %150 = math.exp %149 : vector<2x64xf32>
    %cst_23 = arith.constant 1.000000e+00 : f32
    %151 = vector.broadcast %cst_23 : f32 to vector<2x64xf32>
    %152 = arith.addf %151, %150 : vector<2x64xf32>
    %153 = arith.divf %151, %152 : vector<2x64xf32>
    %154 = vector.extract_strided_slice %153 {offsets = [0, 0], sizes = [2, 32], strides = [1, 1]} : vector<2x64xf32> to vector<2x32xf32>
    %155 = vector.extract_strided_slice %153 {offsets = [0, 32], sizes = [2, 32], strides = [1, 1]} : vector<2x64xf32> to vector<2x32xf32>
    %156 = vector.extract_strided_slice %8 {offsets = [0, 6, 64], sizes = [2, 1, 32], strides = [1, 1, 1]} : vector<2x8x96xf32> to vector<2x1x32xf32>
    %157 = vector.shape_cast %156 : vector<2x1x32xf32> to vector<2x32xf32>
    %158 = vector.extract_strided_slice %144 {offsets = [0, 64], sizes = [2, 32], strides = [1, 1]} : vector<2x96xf32> to vector<2x32xf32>
    %159 = arith.addf %158, %10 : vector<2x32xf32>
    %160 = arith.mulf %154, %159 : vector<2x32xf32>
    %161 = arith.addf %157, %160 : vector<2x32xf32>
    %162 = math.tanh %161 : vector<2x32xf32>
    %163 = arith.subf %143, %162 : vector<2x32xf32>
    %164 = arith.mulf %155, %163 : vector<2x32xf32>
    %165 = arith.addf %162, %164 : vector<2x32xf32>
    %cst_24 = arith.constant dense<0.000000e+00> : vector<2x96xf32>
    %166 = tpu.matmul %165, %2, %cst_24 {dimension_numbers = #tpu.dot_dimension_numbers<[1], [0], [0], [1], [0, 0, 1, 1], [], []>} : vector<2x32xf32>, vector<32x96xf32>, vector<2x96xf32> -> vector<2x96xf32>
    %167 = vector.extract_strided_slice %8 {offsets = [0, 7, 0], sizes = [2, 1, 64], strides = [1, 1, 1]} : vector<2x8x96xf32> to vector<2x1x64xf32>
    %168 = vector.shape_cast %167 : vector<2x1x64xf32> to vector<2x64xf32>
    %169 = vector.extract_strided_slice %166 {offsets = [0, 0], sizes = [2, 64], strides = [1, 1]} : vector<2x96xf32> to vector<2x64xf32>
    %170 = arith.addf %168, %169 : vector<2x64xf32>
    %171 = arith.negf %170 : vector<2x64xf32>
    %172 = math.exp %171 : vector<2x64xf32>
    %cst_25 = arith.constant 1.000000e+00 : f32
    %173 = vector.broadcast %cst_25 : f32 to vector<2x64xf32>
    %174 = arith.addf %173, %172 : vector<2x64xf32>
    %175 = arith.divf %173, %174 : vector<2x64xf32>
    %176 = vector.extract_strided_slice %175 {offsets = [0, 0], sizes = [2, 32], strides = [1, 1]} : vector<2x64xf32> to vector<2x32xf32>
    %177 = vector.extract_strided_slice %175 {offsets = [0, 32], sizes = [2, 32], strides = [1, 1]} : vector<2x64xf32> to vector<2x32xf32>
    %178 = vector.extract_strided_slice %8 {offsets = [0, 7, 64], sizes = [2, 1, 32], strides = [1, 1, 1]} : vector<2x8x96xf32> to vector<2x1x32xf32>
    %179 = vector.shape_cast %178 : vector<2x1x32xf32> to vector<2x32xf32>
    %180 = vector.extract_strided_slice %166 {offsets = [0, 64], sizes = [2, 32], strides = [1, 1]} : vector<2x96xf32> to vector<2x32xf32>
    %181 = arith.addf %180, %10 : vector<2x32xf32>
    %182 = arith.mulf %176, %181 : vector<2x32xf32>
    %183 = arith.addf %179, %182 : vector<2x32xf32>
    %184 = math.tanh %183 : vector<2x32xf32>
    %185 = arith.subf %165, %184 : vector<2x32xf32>
    %186 = arith.mulf %177, %185 : vector<2x32xf32>
    %187 = arith.addf %184, %186 : vector<2x32xf32>
    %188 = vector.shape_cast %33 : vector<2x32xf32> to vector<2x1x32xf32>
    %189 = vector.shape_cast %55 : vector<2x32xf32> to vector<2x1x32xf32>
    %190 = vector.shape_cast %77 : vector<2x32xf32> to vector<2x1x32xf32>
    %191 = vector.shape_cast %99 : vector<2x32xf32> to vector<2x1x32xf32>
    %192 = vector.shape_cast %121 : vector<2x32xf32> to vector<2x1x32xf32>
    %193 = vector.shape_cast %143 : vector<2x32xf32> to vector<2x1x32xf32>
    %194 = vector.shape_cast %165 : vector<2x32xf32> to vector<2x1x32xf32>
    %195 = vector.shape_cast %187 : vector<2x32xf32> to vector<2x1x32xf32>
    %196 = tpu.concatenate %188, %189, %190, %191, %192, %193, %194, %195 in 1 : vector<2x1x32xf32>, vector<2x1x32xf32>, vector<2x1x32xf32>, vector<2x1x32xf32>, vector<2x1x32xf32>, vector<2x1x32xf32>, vector<2x1x32xf32>, vector<2x1x32xf32> -> vector<2x8x32xf32>
    %197 = vector.shape_cast %196 : vector<2x8x32xf32> to vector<16x32xf32>
    %c0_26 = arith.constant 0 : index
    %c0_27 = arith.constant 0 : index
    %198 = vector.load %arg5[%c0_26, %c0_27] : memref<32x96xf32, #tpu.memory_space<vmem>>, vector<32x96xf32>
    %c0_28 = arith.constant 0 : index
    %c0_29 = arith.constant 0 : index
    %199 = vector.load %arg6[%c0_28, %c0_29] : memref<32x96xf32, #tpu.memory_space<vmem>>, vector<32x96xf32>
    %c0_30 = arith.constant 0 : index
    %c0_31 = arith.constant 0 : index
    %200 = vector.load %arg7[%c0_30, %c0_31] : memref<1x96xf32, #tpu.memory_space<vmem>>, vector<1x96xf32>
    %c0_32 = arith.constant 0 : index
    %c0_33 = arith.constant 0 : index
    %201 = vector.load %arg8[%c0_32, %c0_33] : memref<1x32xf32, #tpu.memory_space<vmem>>, vector<1x32xf32>
    %cst_34 = arith.constant dense<0.000000e+00> : vector<16x96xf32>
    %202 = tpu.matmul %197, %198, %cst_34 {dimension_numbers = #tpu.dot_dimension_numbers<[1], [0], [0], [1], [0, 0, 1, 1], [], []>} : vector<16x32xf32>, vector<32x96xf32>, vector<16x96xf32> -> vector<16x96xf32>
    %203 = vector.broadcast %200 : vector<1x96xf32> to vector<16x96xf32>
    %204 = arith.addf %202, %203 : vector<16x96xf32>
    %205 = vector.shape_cast %204 : vector<16x96xf32> to vector<2x8x96xf32>
    %206 = vector.shape_cast %201 : vector<1x32xf32> to vector<1x32xf32>
    %207 = vector.broadcast %206 : vector<1x32xf32> to vector<2x32xf32>
    %cst_35 = arith.constant 0.000000e+00 : f32
    %208 = vector.broadcast %cst_35 : f32 to vector<2x32xf32>
    %cst_36 = arith.constant dense<0.000000e+00> : vector<2x96xf32>
    %209 = tpu.matmul %208, %199, %cst_36 {dimension_numbers = #tpu.dot_dimension_numbers<[1], [0], [0], [1], [0, 0, 1, 1], [], []>} : vector<2x32xf32>, vector<32x96xf32>, vector<2x96xf32> -> vector<2x96xf32>
    %210 = vector.extract_strided_slice %205 {offsets = [0, 0, 0], sizes = [2, 1, 64], strides = [1, 1, 1]} : vector<2x8x96xf32> to vector<2x1x64xf32>
    %211 = vector.shape_cast %210 : vector<2x1x64xf32> to vector<2x64xf32>
    %212 = vector.extract_strided_slice %209 {offsets = [0, 0], sizes = [2, 64], strides = [1, 1]} : vector<2x96xf32> to vector<2x64xf32>
    %213 = arith.addf %211, %212 : vector<2x64xf32>
    %214 = arith.negf %213 : vector<2x64xf32>
    %215 = math.exp %214 : vector<2x64xf32>
    %cst_37 = arith.constant 1.000000e+00 : f32
    %216 = vector.broadcast %cst_37 : f32 to vector<2x64xf32>
    %217 = arith.addf %216, %215 : vector<2x64xf32>
    %218 = arith.divf %216, %217 : vector<2x64xf32>
    %219 = vector.extract_strided_slice %218 {offsets = [0, 0], sizes = [2, 32], strides = [1, 1]} : vector<2x64xf32> to vector<2x32xf32>
    %220 = vector.extract_strided_slice %218 {offsets = [0, 32], sizes = [2, 32], strides = [1, 1]} : vector<2x64xf32> to vector<2x32xf32>
    %221 = vector.extract_strided_slice %205 {offsets = [0, 0, 64], sizes = [2, 1, 32], strides = [1, 1, 1]} : vector<2x8x96xf32> to vector<2x1x32xf32>
    %222 = vector.shape_cast %221 : vector<2x1x32xf32> to vector<2x32xf32>
    %223 = vector.extract_strided_slice %209 {offsets = [0, 64], sizes = [2, 32], strides = [1, 1]} : vector<2x96xf32> to vector<2x32xf32>
    %224 = arith.addf %223, %207 : vector<2x32xf32>
    %225 = arith.mulf %219, %224 : vector<2x32xf32>
    %226 = arith.addf %222, %225 : vector<2x32xf32>
    %227 = math.tanh %226 : vector<2x32xf32>
    %228 = arith.subf %208, %227 : vector<2x32xf32>
    %229 = arith.mulf %220, %228 : vector<2x32xf32>
    %230 = arith.addf %227, %229 : vector<2x32xf32>
    %cst_38 = arith.constant dense<0.000000e+00> : vector<2x96xf32>
    %231 = tpu.matmul %230, %199, %cst_38 {dimension_numbers = #tpu.dot_dimension_numbers<[1], [0], [0], [1], [0, 0, 1, 1], [], []>} : vector<2x32xf32>, vector<32x96xf32>, vector<2x96xf32> -> vector<2x96xf32>
    %232 = vector.extract_strided_slice %205 {offsets = [0, 1, 0], sizes = [2, 1, 64], strides = [1, 1, 1]} : vector<2x8x96xf32> to vector<2x1x64xf32>
    %233 = vector.shape_cast %232 : vector<2x1x64xf32> to vector<2x64xf32>
    %234 = vector.extract_strided_slice %231 {offsets = [0, 0], sizes = [2, 64], strides = [1, 1]} : vector<2x96xf32> to vector<2x64xf32>
    %235 = arith.addf %233, %234 : vector<2x64xf32>
    %236 = arith.negf %235 : vector<2x64xf32>
    %237 = math.exp %236 : vector<2x64xf32>
    %cst_39 = arith.constant 1.000000e+00 : f32
    %238 = vector.broadcast %cst_39 : f32 to vector<2x64xf32>
    %239 = arith.addf %238, %237 : vector<2x64xf32>
    %240 = arith.divf %238, %239 : vector<2x64xf32>
    %241 = vector.extract_strided_slice %240 {offsets = [0, 0], sizes = [2, 32], strides = [1, 1]} : vector<2x64xf32> to vector<2x32xf32>
    %242 = vector.extract_strided_slice %240 {offsets = [0, 32], sizes = [2, 32], strides = [1, 1]} : vector<2x64xf32> to vector<2x32xf32>
    %243 = vector.extract_strided_slice %205 {offsets = [0, 1, 64], sizes = [2, 1, 32], strides = [1, 1, 1]} : vector<2x8x96xf32> to vector<2x1x32xf32>
    %244 = vector.shape_cast %243 : vector<2x1x32xf32> to vector<2x32xf32>
    %245 = vector.extract_strided_slice %231 {offsets = [0, 64], sizes = [2, 32], strides = [1, 1]} : vector<2x96xf32> to vector<2x32xf32>
    %246 = arith.addf %245, %207 : vector<2x32xf32>
    %247 = arith.mulf %241, %246 : vector<2x32xf32>
    %248 = arith.addf %244, %247 : vector<2x32xf32>
    %249 = math.tanh %248 : vector<2x32xf32>
    %250 = arith.subf %230, %249 : vector<2x32xf32>
    %251 = arith.mulf %242, %250 : vector<2x32xf32>
    %252 = arith.addf %249, %251 : vector<2x32xf32>
    %cst_40 = arith.constant dense<0.000000e+00> : vector<2x96xf32>
    %253 = tpu.matmul %252, %199, %cst_40 {dimension_numbers = #tpu.dot_dimension_numbers<[1], [0], [0], [1], [0, 0, 1, 1], [], []>} : vector<2x32xf32>, vector<32x96xf32>, vector<2x96xf32> -> vector<2x96xf32>
    %254 = vector.extract_strided_slice %205 {offsets = [0, 2, 0], sizes = [2, 1, 64], strides = [1, 1, 1]} : vector<2x8x96xf32> to vector<2x1x64xf32>
    %255 = vector.shape_cast %254 : vector<2x1x64xf32> to vector<2x64xf32>
    %256 = vector.extract_strided_slice %253 {offsets = [0, 0], sizes = [2, 64], strides = [1, 1]} : vector<2x96xf32> to vector<2x64xf32>
    %257 = arith.addf %255, %256 : vector<2x64xf32>
    %258 = arith.negf %257 : vector<2x64xf32>
    %259 = math.exp %258 : vector<2x64xf32>
    %cst_41 = arith.constant 1.000000e+00 : f32
    %260 = vector.broadcast %cst_41 : f32 to vector<2x64xf32>
    %261 = arith.addf %260, %259 : vector<2x64xf32>
    %262 = arith.divf %260, %261 : vector<2x64xf32>
    %263 = vector.extract_strided_slice %262 {offsets = [0, 0], sizes = [2, 32], strides = [1, 1]} : vector<2x64xf32> to vector<2x32xf32>
    %264 = vector.extract_strided_slice %262 {offsets = [0, 32], sizes = [2, 32], strides = [1, 1]} : vector<2x64xf32> to vector<2x32xf32>
    %265 = vector.extract_strided_slice %205 {offsets = [0, 2, 64], sizes = [2, 1, 32], strides = [1, 1, 1]} : vector<2x8x96xf32> to vector<2x1x32xf32>
    %266 = vector.shape_cast %265 : vector<2x1x32xf32> to vector<2x32xf32>
    %267 = vector.extract_strided_slice %253 {offsets = [0, 64], sizes = [2, 32], strides = [1, 1]} : vector<2x96xf32> to vector<2x32xf32>
    %268 = arith.addf %267, %207 : vector<2x32xf32>
    %269 = arith.mulf %263, %268 : vector<2x32xf32>
    %270 = arith.addf %266, %269 : vector<2x32xf32>
    %271 = math.tanh %270 : vector<2x32xf32>
    %272 = arith.subf %252, %271 : vector<2x32xf32>
    %273 = arith.mulf %264, %272 : vector<2x32xf32>
    %274 = arith.addf %271, %273 : vector<2x32xf32>
    %cst_42 = arith.constant dense<0.000000e+00> : vector<2x96xf32>
    %275 = tpu.matmul %274, %199, %cst_42 {dimension_numbers = #tpu.dot_dimension_numbers<[1], [0], [0], [1], [0, 0, 1, 1], [], []>} : vector<2x32xf32>, vector<32x96xf32>, vector<2x96xf32> -> vector<2x96xf32>
    %276 = vector.extract_strided_slice %205 {offsets = [0, 3, 0], sizes = [2, 1, 64], strides = [1, 1, 1]} : vector<2x8x96xf32> to vector<2x1x64xf32>
    %277 = vector.shape_cast %276 : vector<2x1x64xf32> to vector<2x64xf32>
    %278 = vector.extract_strided_slice %275 {offsets = [0, 0], sizes = [2, 64], strides = [1, 1]} : vector<2x96xf32> to vector<2x64xf32>
    %279 = arith.addf %277, %278 : vector<2x64xf32>
    %280 = arith.negf %279 : vector<2x64xf32>
    %281 = math.exp %280 : vector<2x64xf32>
    %cst_43 = arith.constant 1.000000e+00 : f32
    %282 = vector.broadcast %cst_43 : f32 to vector<2x64xf32>
    %283 = arith.addf %282, %281 : vector<2x64xf32>
    %284 = arith.divf %282, %283 : vector<2x64xf32>
    %285 = vector.extract_strided_slice %284 {offsets = [0, 0], sizes = [2, 32], strides = [1, 1]} : vector<2x64xf32> to vector<2x32xf32>
    %286 = vector.extract_strided_slice %284 {offsets = [0, 32], sizes = [2, 32], strides = [1, 1]} : vector<2x64xf32> to vector<2x32xf32>
    %287 = vector.extract_strided_slice %205 {offsets = [0, 3, 64], sizes = [2, 1, 32], strides = [1, 1, 1]} : vector<2x8x96xf32> to vector<2x1x32xf32>
    %288 = vector.shape_cast %287 : vector<2x1x32xf32> to vector<2x32xf32>
    %289 = vector.extract_strided_slice %275 {offsets = [0, 64], sizes = [2, 32], strides = [1, 1]} : vector<2x96xf32> to vector<2x32xf32>
    %290 = arith.addf %289, %207 : vector<2x32xf32>
    %291 = arith.mulf %285, %290 : vector<2x32xf32>
    %292 = arith.addf %288, %291 : vector<2x32xf32>
    %293 = math.tanh %292 : vector<2x32xf32>
    %294 = arith.subf %274, %293 : vector<2x32xf32>
    %295 = arith.mulf %286, %294 : vector<2x32xf32>
    %296 = arith.addf %293, %295 : vector<2x32xf32>
    %cst_44 = arith.constant dense<0.000000e+00> : vector<2x96xf32>
    %297 = tpu.matmul %296, %199, %cst_44 {dimension_numbers = #tpu.dot_dimension_numbers<[1], [0], [0], [1], [0, 0, 1, 1], [], []>} : vector<2x32xf32>, vector<32x96xf32>, vector<2x96xf32> -> vector<2x96xf32>
    %298 = vector.extract_strided_slice %205 {offsets = [0, 4, 0], sizes = [2, 1, 64], strides = [1, 1, 1]} : vector<2x8x96xf32> to vector<2x1x64xf32>
    %299 = vector.shape_cast %298 : vector<2x1x64xf32> to vector<2x64xf32>
    %300 = vector.extract_strided_slice %297 {offsets = [0, 0], sizes = [2, 64], strides = [1, 1]} : vector<2x96xf32> to vector<2x64xf32>
    %301 = arith.addf %299, %300 : vector<2x64xf32>
    %302 = arith.negf %301 : vector<2x64xf32>
    %303 = math.exp %302 : vector<2x64xf32>
    %cst_45 = arith.constant 1.000000e+00 : f32
    %304 = vector.broadcast %cst_45 : f32 to vector<2x64xf32>
    %305 = arith.addf %304, %303 : vector<2x64xf32>
    %306 = arith.divf %304, %305 : vector<2x64xf32>
    %307 = vector.extract_strided_slice %306 {offsets = [0, 0], sizes = [2, 32], strides = [1, 1]} : vector<2x64xf32> to vector<2x32xf32>
    %308 = vector.extract_strided_slice %306 {offsets = [0, 32], sizes = [2, 32], strides = [1, 1]} : vector<2x64xf32> to vector<2x32xf32>
    %309 = vector.extract_strided_slice %205 {offsets = [0, 4, 64], sizes = [2, 1, 32], strides = [1, 1, 1]} : vector<2x8x96xf32> to vector<2x1x32xf32>
    %310 = vector.shape_cast %309 : vector<2x1x32xf32> to vector<2x32xf32>
    %311 = vector.extract_strided_slice %297 {offsets = [0, 64], sizes = [2, 32], strides = [1, 1]} : vector<2x96xf32> to vector<2x32xf32>
    %312 = arith.addf %311, %207 : vector<2x32xf32>
    %313 = arith.mulf %307, %312 : vector<2x32xf32>
    %314 = arith.addf %310, %313 : vector<2x32xf32>
    %315 = math.tanh %314 : vector<2x32xf32>
    %316 = arith.subf %296, %315 : vector<2x32xf32>
    %317 = arith.mulf %308, %316 : vector<2x32xf32>
    %318 = arith.addf %315, %317 : vector<2x32xf32>
    %cst_46 = arith.constant dense<0.000000e+00> : vector<2x96xf32>
    %319 = tpu.matmul %318, %199, %cst_46 {dimension_numbers = #tpu.dot_dimension_numbers<[1], [0], [0], [1], [0, 0, 1, 1], [], []>} : vector<2x32xf32>, vector<32x96xf32>, vector<2x96xf32> -> vector<2x96xf32>
    %320 = vector.extract_strided_slice %205 {offsets = [0, 5, 0], sizes = [2, 1, 64], strides = [1, 1, 1]} : vector<2x8x96xf32> to vector<2x1x64xf32>
    %321 = vector.shape_cast %320 : vector<2x1x64xf32> to vector<2x64xf32>
    %322 = vector.extract_strided_slice %319 {offsets = [0, 0], sizes = [2, 64], strides = [1, 1]} : vector<2x96xf32> to vector<2x64xf32>
    %323 = arith.addf %321, %322 : vector<2x64xf32>
    %324 = arith.negf %323 : vector<2x64xf32>
    %325 = math.exp %324 : vector<2x64xf32>
    %cst_47 = arith.constant 1.000000e+00 : f32
    %326 = vector.broadcast %cst_47 : f32 to vector<2x64xf32>
    %327 = arith.addf %326, %325 : vector<2x64xf32>
    %328 = arith.divf %326, %327 : vector<2x64xf32>
    %329 = vector.extract_strided_slice %328 {offsets = [0, 0], sizes = [2, 32], strides = [1, 1]} : vector<2x64xf32> to vector<2x32xf32>
    %330 = vector.extract_strided_slice %328 {offsets = [0, 32], sizes = [2, 32], strides = [1, 1]} : vector<2x64xf32> to vector<2x32xf32>
    %331 = vector.extract_strided_slice %205 {offsets = [0, 5, 64], sizes = [2, 1, 32], strides = [1, 1, 1]} : vector<2x8x96xf32> to vector<2x1x32xf32>
    %332 = vector.shape_cast %331 : vector<2x1x32xf32> to vector<2x32xf32>
    %333 = vector.extract_strided_slice %319 {offsets = [0, 64], sizes = [2, 32], strides = [1, 1]} : vector<2x96xf32> to vector<2x32xf32>
    %334 = arith.addf %333, %207 : vector<2x32xf32>
    %335 = arith.mulf %329, %334 : vector<2x32xf32>
    %336 = arith.addf %332, %335 : vector<2x32xf32>
    %337 = math.tanh %336 : vector<2x32xf32>
    %338 = arith.subf %318, %337 : vector<2x32xf32>
    %339 = arith.mulf %330, %338 : vector<2x32xf32>
    %340 = arith.addf %337, %339 : vector<2x32xf32>
    %cst_48 = arith.constant dense<0.000000e+00> : vector<2x96xf32>
    %341 = tpu.matmul %340, %199, %cst_48 {dimension_numbers = #tpu.dot_dimension_numbers<[1], [0], [0], [1], [0, 0, 1, 1], [], []>} : vector<2x32xf32>, vector<32x96xf32>, vector<2x96xf32> -> vector<2x96xf32>
    %342 = vector.extract_strided_slice %205 {offsets = [0, 6, 0], sizes = [2, 1, 64], strides = [1, 1, 1]} : vector<2x8x96xf32> to vector<2x1x64xf32>
    %343 = vector.shape_cast %342 : vector<2x1x64xf32> to vector<2x64xf32>
    %344 = vector.extract_strided_slice %341 {offsets = [0, 0], sizes = [2, 64], strides = [1, 1]} : vector<2x96xf32> to vector<2x64xf32>
    %345 = arith.addf %343, %344 : vector<2x64xf32>
    %346 = arith.negf %345 : vector<2x64xf32>
    %347 = math.exp %346 : vector<2x64xf32>
    %cst_49 = arith.constant 1.000000e+00 : f32
    %348 = vector.broadcast %cst_49 : f32 to vector<2x64xf32>
    %349 = arith.addf %348, %347 : vector<2x64xf32>
    %350 = arith.divf %348, %349 : vector<2x64xf32>
    %351 = vector.extract_strided_slice %350 {offsets = [0, 0], sizes = [2, 32], strides = [1, 1]} : vector<2x64xf32> to vector<2x32xf32>
    %352 = vector.extract_strided_slice %350 {offsets = [0, 32], sizes = [2, 32], strides = [1, 1]} : vector<2x64xf32> to vector<2x32xf32>
    %353 = vector.extract_strided_slice %205 {offsets = [0, 6, 64], sizes = [2, 1, 32], strides = [1, 1, 1]} : vector<2x8x96xf32> to vector<2x1x32xf32>
    %354 = vector.shape_cast %353 : vector<2x1x32xf32> to vector<2x32xf32>
    %355 = vector.extract_strided_slice %341 {offsets = [0, 64], sizes = [2, 32], strides = [1, 1]} : vector<2x96xf32> to vector<2x32xf32>
    %356 = arith.addf %355, %207 : vector<2x32xf32>
    %357 = arith.mulf %351, %356 : vector<2x32xf32>
    %358 = arith.addf %354, %357 : vector<2x32xf32>
    %359 = math.tanh %358 : vector<2x32xf32>
    %360 = arith.subf %340, %359 : vector<2x32xf32>
    %361 = arith.mulf %352, %360 : vector<2x32xf32>
    %362 = arith.addf %359, %361 : vector<2x32xf32>
    %cst_50 = arith.constant dense<0.000000e+00> : vector<2x96xf32>
    %363 = tpu.matmul %362, %199, %cst_50 {dimension_numbers = #tpu.dot_dimension_numbers<[1], [0], [0], [1], [0, 0, 1, 1], [], []>} : vector<2x32xf32>, vector<32x96xf32>, vector<2x96xf32> -> vector<2x96xf32>
    %364 = vector.extract_strided_slice %205 {offsets = [0, 7, 0], sizes = [2, 1, 64], strides = [1, 1, 1]} : vector<2x8x96xf32> to vector<2x1x64xf32>
    %365 = vector.shape_cast %364 : vector<2x1x64xf32> to vector<2x64xf32>
    %366 = vector.extract_strided_slice %363 {offsets = [0, 0], sizes = [2, 64], strides = [1, 1]} : vector<2x96xf32> to vector<2x64xf32>
    %367 = arith.addf %365, %366 : vector<2x64xf32>
    %368 = arith.negf %367 : vector<2x64xf32>
    %369 = math.exp %368 : vector<2x64xf32>
    %cst_51 = arith.constant 1.000000e+00 : f32
    %370 = vector.broadcast %cst_51 : f32 to vector<2x64xf32>
    %371 = arith.addf %370, %369 : vector<2x64xf32>
    %372 = arith.divf %370, %371 : vector<2x64xf32>
    %373 = vector.extract_strided_slice %372 {offsets = [0, 0], sizes = [2, 32], strides = [1, 1]} : vector<2x64xf32> to vector<2x32xf32>
    %374 = vector.extract_strided_slice %372 {offsets = [0, 32], sizes = [2, 32], strides = [1, 1]} : vector<2x64xf32> to vector<2x32xf32>
    %375 = vector.extract_strided_slice %205 {offsets = [0, 7, 64], sizes = [2, 1, 32], strides = [1, 1, 1]} : vector<2x8x96xf32> to vector<2x1x32xf32>
    %376 = vector.shape_cast %375 : vector<2x1x32xf32> to vector<2x32xf32>
    %377 = vector.extract_strided_slice %363 {offsets = [0, 64], sizes = [2, 32], strides = [1, 1]} : vector<2x96xf32> to vector<2x32xf32>
    %378 = arith.addf %377, %207 : vector<2x32xf32>
    %379 = arith.mulf %373, %378 : vector<2x32xf32>
    %380 = arith.addf %376, %379 : vector<2x32xf32>
    %381 = math.tanh %380 : vector<2x32xf32>
    %382 = arith.subf %362, %381 : vector<2x32xf32>
    %383 = arith.mulf %374, %382 : vector<2x32xf32>
    %384 = arith.addf %381, %383 : vector<2x32xf32>
    %385 = vector.shape_cast %230 : vector<2x32xf32> to vector<2x1x32xf32>
    %386 = vector.shape_cast %252 : vector<2x32xf32> to vector<2x1x32xf32>
    %387 = vector.shape_cast %274 : vector<2x32xf32> to vector<2x1x32xf32>
    %388 = vector.shape_cast %296 : vector<2x32xf32> to vector<2x1x32xf32>
    %389 = vector.shape_cast %318 : vector<2x32xf32> to vector<2x1x32xf32>
    %390 = vector.shape_cast %340 : vector<2x32xf32> to vector<2x1x32xf32>
    %391 = vector.shape_cast %362 : vector<2x32xf32> to vector<2x1x32xf32>
    %392 = vector.shape_cast %384 : vector<2x32xf32> to vector<2x1x32xf32>
    %393 = tpu.concatenate %385, %386, %387, %388, %389, %390, %391, %392 in 1 : vector<2x1x32xf32>, vector<2x1x32xf32>, vector<2x1x32xf32>, vector<2x1x32xf32>, vector<2x1x32xf32>, vector<2x1x32xf32>, vector<2x1x32xf32>, vector<2x1x32xf32> -> vector<2x8x32xf32>
    %394 = vector.shape_cast %393 : vector<2x8x32xf32> to vector<16x32xf32>
    %c0_52 = arith.constant 0 : index
    %c0_53 = arith.constant 0 : index
    %395 = vector.load %arg9[%c0_52, %c0_53] : memref<32x3xf32, #tpu.memory_space<vmem>>, vector<32x3xf32>
    %cst_54 = arith.constant dense<0.000000e+00> : vector<16x3xf32>
    %396 = tpu.matmul %394, %395, %cst_54 {dimension_numbers = #tpu.dot_dimension_numbers<[1], [0], [0], [1], [0, 0, 1, 1], [], []>} : vector<16x32xf32>, vector<32x3xf32>, vector<16x3xf32> -> vector<16x3xf32>
    %c0_55 = arith.constant 0 : index
    %c0_56 = arith.constant 0 : index
    %397 = vector.load %arg10[%c0_55, %c0_56] : memref<1x3xf32, #tpu.memory_space<vmem>>, vector<1x3xf32>
    %398 = vector.broadcast %397 : vector<1x3xf32> to vector<16x3xf32>
    %399 = arith.addf %396, %398 : vector<16x3xf32>
    %c0_57 = arith.constant 0 : index
    %c0_58 = arith.constant 0 : index
    %400 = vector.load %arg11[%c0_57, %c0_58] : memref<16x3xf32, #tpu.memory_space<vmem>>, vector<16x3xf32>
    tpu.vector_store %arg11[%c0_57, %c0_58], %399 {strides = array<i32>} : memref<16x3xf32, #tpu.memory_space<vmem>>, vector<16x3xf32>,
    return
  }
}

</mosaic_0001>

<bundles_post_ra>
// kernel: tpu_custom_call.1
= control target key start
LH: loop header
LB: loop body
LE: loop exit
PB: predicated region body
PF: predicated region fallthrough
CT: control target
= control target key end

     0   :  { %16 = vsyncpa [#allocation3], 0  ;;  %s4242_s0 = inlined_call_operand.vmem [shape: f32[16,4], index: 0, kind: input, shape index: {}]   ;;  %s4243_s1 = inlined_call_operand.hbm [shape: f32[4,96], index: 1, kind: input, shape index: {}]   ;;  %s4244_s2 = inlined_call_operand.vmem [shape: f32[32,96], index: 2, kind: input, shape index: {}]   ;;  %s4245_s3 = inlined_call_operand.vmem [shape: f32[1,96], index: 3, kind: input, shape index: {}]   ;;  %s4246_s4 = inlined_call_operand.vmem [shape: f32[1,32], index: 4, kind: input, shape index: {}]   ;;  %s4247_s5 = inlined_call_operand.vmem [shape: f32[32,96], index: 5, kind: input, shape index: {}]   ;;  %s4248_s6 = inlined_call_operand.hbm [shape: f32[32,96], index: 6, kind: input, shape index: {}]   ;;  %s4249_s7 = inlined_call_operand.vmem [shape: f32[1,96], index: 7, kind: input, shape index: {}]   ;;  %s4250_s8 = inlined_call_operand.vmem [shape: f32[1,32], index: 8, kind: input, shape index: {}]   ;;  %s4251_s9 = inlined_call_operand.vmem [shape: f32[32,3], index: 9, kind: input, shape index: {}]   ;;  %s4252_s10 = inlined_call_operand.vmem [shape: f32[1,3], index: 10, kind: input, shape index: {}]   ;;  %s4253_s11 = inlined_call_operand.vmem [shape: f32[16,3], index: 11, kind: output, shape index: {}]  }
   0x1   :  { %17 = vsyncpa [#allocation5], 0  ;;  %s3530_s17 = smov [#allocation2]   ;;  %s3531_s19 = smov [#allocation4]  }
   0x2   :  { %s26_s18 = sshll.u32 %s3530_s17, 4  ;;  %s43_s20 = sshll.u32 %s3531_s19, 4  ;;  %s27_s18 = int_to_ptr.vmem [resolvable:$true] %s26_s18  ;;  %s3600_s20 = int_to_ptr.vmem [resolvable:$true] %s43_s20 }
   0x3   :  { %s3482_s23 = scalar_lea.hbm %s4243_s1, 64 }
   0x4   :  { %p3483_p0 = scmp.ne.s32.totalorder %s4243_s1, %s3482_s23  ;;  %p3486_p1 = scmp.lt.u32.totalorder %s3482_s23, %s4243_s1 }
   0x6   :  { %p3488_p2 = pnand %p3486_p1, %p3483_p0 }
   0x8   :  { %3491 = shalt.err (!%p3488_p2)
}
   0x9   :  { %s3492_s28 = scalar_lea.vmem %s27_s18, 64  ;;  %p3497_p4 = scmp.lt.s32.totalorder %s27_s18, %s27_s18 }
   0xa   :  { %p3493_p3 = scmp.ne.s32.totalorder %s27_s18, %s3492_s28  ;;  %p3498_p5 = scmp.lt.s32.totalorder %s3492_s28, %s3492_s28 }
   0xc   :  { %p3499_p6 = por %p3498_p5, %p3497_p4 }
   0xe   :  { %p3500_p7 = pnand %p3499_p6, %p3493_p3 }
  0x10   :  { %3503 = shalt.err (!%p3500_p7)
}
  0x11   :  { %29 = dma.hbm_to_vmem [thread:$0]  %s4243_s1, 64, %s27_s18, [#allocation3]  }
  0x12   :  { %s3504_s14 = scalar_lea.hbm %s4248_s6, 512 }
  0x13   :  { %p3505_p8 = scmp.ne.s32.totalorder %s4248_s6, %s3504_s14  ;;  %p3508_p9 = scmp.lt.u32.totalorder %s3504_s14, %s4248_s6 }
  0x15   :  { %p3510_p10 = pnand %p3508_p9, %p3505_p8 }
  0x17   :  { %3513 = shalt.err (!%p3510_p10)
}
  0x18   :  { %s3514_s21 = scalar_lea.vmem %s3600_s20, 512  ;;  %p3519_p12 = scmp.lt.s32.totalorder %s3600_s20, %s3600_s20 }
  0x19   :  { %p3515_p11 = scmp.ne.s32.totalorder %s3600_s20, %s3514_s21  ;;  %p3520_p13 = scmp.lt.s32.totalorder %s3514_s21, %s3514_s21 }
  0x1b   :  { %p3521_p0 = por %p3520_p13, %p3519_p12 }
  0x1d   :  { %p3522_p1 = pnand %p3521_p0, %p3515_p11 }
  0x1f   :  { %3525 = shalt.err (!%p3522_p1)
}
  0x20   :  { %s3532_s1 = smov 128   ;;  %s3533_s18 = smov 8  }
  0x21   :  { %49 = dma.hbm_to_vmem [thread:$0]  %s4248_s6, 512, %s3600_s20, [#allocation5], %s3532_s1, %s3532_s1, %s3533_s18  }
  0x22   :  { %3526 = dma.done.wait [#allocation3], 64  }
  0x23   :  { %3527 = vsyncadd [#allocation3], 4294967232 }
  0x24   :  { %3528 = dma.done.wait [#allocation5], 512  }
  0x25   :  { %3529 = vsyncadd [#allocation5], 4294966784  ;;  %v3534_v0 = vmov 0.0|0.0   ;;  %vm3535_vm0 = vmmov 0   ;;  %v3536_v1 = vmov 0.0   ;;  %vm86_vm1 = vcmask 1043456  }
  0x26   :  { %3168 = vmatprep.subr.bf16.mxu1 %v3534_v0  ;;  %2978 = vmatprep.mubr.msk.f32.mxu1 %vm3535_vm0, %v3536_v1  ;;  %vm79_vm2 = vcmask 31744   ;;  %v67_v2 = vld [vmem:[%s4244_s2] sm:$0xff]  ;;  %v68_v3 = vld [vmem:[%s4244_s2 + $0x8] sm:$0xff]  ;;  %v69_v8 = vld [vmem:[%s4244_s2 + $0x10] sm:$0xff]  ;;  %s3539_s17 = smov 32   ;;  %vm313_vm3 = vcmask 1041409  }
  0x27   :  { %v66_v4 = vld [vmem:[#allocation2] sm:$0xf]  ;;  %v3640_v5 = vpack.c.bf16 %v68_v3, %v67_v2  ;;  %v65_v7 = vld [vmem:[%s4242_s0 + $0x8] sm:$0xff]  ;;  %v70_v9 = vld [vmem:[%s4244_s2 + $0x18] sm:$0xff]  ;;  %vm170_vm4 = vcmask 261120   ;;  %vm1371_vm5 = vcmask 1040384  }
  0x28   :  { %2965 = vmatprep.subr.msk.mxu0 %vm86_vm1, %v66_v4  ;;  %v64_v6 = vld [vmem:[%s4242_s0] sm:$0xff]  ;;  %v3660_v11 = vpack.c.bf16 %v70_v9, %v69_v8  ;;  %s3537_s0 = smov 64   ;;  %vm1374_vm6 = vcmask 1041408   ;;  %vm1377_vm7 = vcmask 1042432   ;;  %vm1382_vm8 = vcmask 1044480  }
  0x29   :  { %2966 = vmatpush3.msk.msra.mxu0 %vm86_vm1, %v66_v4  ;;  %2967 = vmatprep.mubr.msk.f32.mxu0 %vm79_vm2, %v64_v6  ;;  %v2816_v10 = vld [vmem:[%s4246_s4] ss:$0 sm:$0xff]  ;;  %vm1385_vm9 = vcmask 1045504   ;;  %vm1388_vm10 = vcmask 1046528   ;;  %vm2803_vm11 = vcmask 23552  }
  0x2a   :  { %3170 = vmatpush3.bf16.msra.mxu1 %v3640_v5  ;;  %2968 = vmatmul.mubr.msk.f32.vlgmr.msra.gmra.mrb[0].mxu0 %vm79_vm2, %v65_v7  ;;  %v2812_v19 = vld [vmem:[%s4245_s3] ss:$0 sm:$0xff]  ;;  %s3538_s3 = smov 96  }
  0x2b   :  { %3171 = vmatprep.subr.bf16.mxu1 %v3534_v0  ;;  %262 = vrot.lane.b32.xlu0 %v2816_v10, %s3537_s0 }
  0x2c   :  { %3174 = vmatprep.subr.bf16.mxu0 %v3534_v0  ;;  %2989 = vmatprep.mubr.msk.f32.mxu0 %vm3535_vm0, %v3536_v1 }
  0x2d   :  { %3176 = vmatpush3.bf16.msra.mxu0 %v3640_v5 }
  0x2e   :  { %3173 = vmatpush3.bf16.msra.mxu1 %v3660_v11  ;;  %3177 = vmatprep.subr.bf16.mxu0 %v3534_v0 }
  0x2f   :  { %3180 = vmatprep.subr.bf16.mxu1 %v3534_v0 }
  0x31   :  { %2979 = vmatmul.mubr.f32.vlgmr.msra.gmra.mrb[0].mxu1 %v3536_v1  ;;  %3179 = vmatpush3.bf16.msra.mxu0 %v3660_v11 }
  0x32   :  { %3182 = vmatpush3.bf16.msra.mxu1 %v3640_v5  ;;  %3000 = vmatprep.mubr.msk.f32.mxu1 %vm3535_vm0, %v3536_v1 }
  0x33   :  { %3183 = vmatprep.subr.bf16.mxu1 %v3534_v0  ;;  %3186 = vmatprep.subr.bf16.mxu0 %v3534_v0 }
  0x36   :  { %3185 = vmatpush3.bf16.msra.mxu1 %v3660_v11 }
  0x37   :  { %3192 = vmatprep.subr.bf16.mxu1 %v3534_v0 }
  0x9d   :  { %v3680_v14 = vpop.permute.xlu0 %262 }
  0xfd   :  { %v2969_v12 = vpop.f32.mrb[0].mxu0 }
  0xfe   :  { %v156_v13 = vpop.f32.mrb[1].mxu0  ;;  %v3690_v21 = vadd.f32 %v2969_v12, %v2812_v19 }
  0xff   :  { %v3688_v20 = vadd.f32 %v2812_v19, %v156_v13 }
 0x104   :  { %v240_v15 = vpop.f32.mrb[0].mxu1 }
 0x105   :  { %v2980_v16 = vpop.f32.mrb[1].mxu1  ;;  %v265_v17 = vadd.f32 %v3680_v14, %v240_v15  ;;  %v245_v22 = vrot.slane %v240_v15, 1  ;;  %v248_v23 = vadd.f32 %v240_v15, %v3688_v20 }
 0x107   :  { %268 = vrot.lane.b32.xlu1 %v265_v17, %s3537_s0  ;;  %v267_v18 = vrot.slane %v265_v17, 1  ;;  %v249_v24 = vadd.f32 %v245_v22, %v3690_v21  ;;  %v2817_v25 = vmul.f32 -1.442695, %v248_v23 }
 0x109   :  { %270 = vrot.lane.b32.xlu0 %v267_v18, %s3537_s0  ;;  %v2818_v26 = vmul.f32 -1.442695, %v249_v24  ;;  %3290 = vpow2.f32 %v2817_v25 }
 0x10b   :  { %3292 = vpow2.f32 %v2818_v26 }
 0x113   :  { %v3291_v27 = vpop.eup %3290 }
 0x114   :  { %v256_v29 = vadd.f32 1.0, %v3291_v27 }
 0x115   :  { %v3293_v28 = vpop.eup %3292 }
 0x116   :  { %v257_v30 = vadd.f32 1.0, %v3293_v28  ;;  %3294 = vrcp.f32 %v256_v29 }
 0x118   :  { %3296 = vrcp.f32 %v257_v30 }
 0x120   :  { %v3295_v31 = vpop.eup %3294 }
 0x122   :  { %v3297_v34 = vpop.eup %3296 }
 0x179   :  { %v269_v32 = vpop.permute.xlu1 %268 }
 0x17a   :  { %v274_v33 = vmul.f32 %v3295_v31, %v269_v32 }
 0x17b   :  { %v271_v35 = vpop.permute.xlu0 %270 }
 0x17c   :  { %v275_v36 = vmul.f32 %v3297_v34, %v271_v35  ;;  %278 = vrot.lane.b32.xlu0 %v274_v33, %s3537_s0 }
 0x17e   :  { %280 = vrot.lane.b32.xlu1 %v275_v36, %s3537_s0 }
 0x1ee   :  { %v279_v37 = vpop.permute.xlu0 %278 }
 0x1ef   :  { %v284_v38 = vadd.f32 %v279_v37, %v3688_v20 }
 0x1f0   :  { %v281_v39 = vpop.permute.xlu1 %280 }
 0x1f1   :  { %3298 = vtanh.f32 %v284_v38  ;;  %v285_v40 = vadd.f32 %v281_v39, %v3690_v21 }
 0x1f3   :  { %3300 = vtanh.f32 %v285_v40 }
 0x1fb   :  { %v3299_v41 = vpop.eup %3298 }
 0x1fc   :  { %v288_v42 = vsub.f32 0.0, %v3299_v41 }
 0x1fd   :  { %v3301_v43 = vpop.eup %3300 }
 0x1fe   :  { %292 = vrot.lane.b32.xlu0 %v288_v42, %s3538_s3  ;;  %v289_v44 = vsub.f32 0.0, %v3301_v43 }
 0x200   :  { %294 = vrot.lane.b32.xlu1 %v289_v44, %s3538_s3 }
 0x270   :  { %v293_v45 = vpop.permute.xlu0 %292 }
 0x271   :  { %v298_v46 = vmul.f32 %v3295_v31, %v293_v45 }
 0x272   :  { %v295_v47 = vpop.permute.xlu1 %294 }
 0x273   :  { %v299_v48 = vmul.f32 %v3297_v34, %v295_v47  ;;  %302 = vrot.lane.b32.xlu0 %v298_v46, %s3539_s17 }
 0x275   :  { %304 = vrot.lane.b32.xlu1 %v299_v48, %s3539_s17 }
 0x2e5   :  { %v303_v49 = vpop.permute.xlu0 %302 }
 0x2e6   :  { %v3704_v52 = vadd.f32 %v3299_v41, %v303_v49 }
 0x2e7   :  { %v305_v50 = vpop.permute.xlu1 %304 }
 0x2e8   :  { %v3702_v51 = vadd.f32 %v3301_v43, %v305_v50 }
 0x2ea   :  { %v312_v53 = vrot.slane %v3702_v51, 7 }
 0x2ec   :  { %v314_v54 = vsel %vm313_vm3, %v312_v53, %v3704_v52 }
 0x2ed   :  { %315 = vrot.lane.b32.xlu1 %v314_v54, %s3537_s0 }
 0x35f   :  { %v316_v55 = vpop.permute.xlu1 %315 }
 0x360   :  { %2990 = vmatmul.mubr.msk.f32.vlgmr.msra.gmra.mrb[2].mxu0 %vm170_vm4, %v316_v55 }
 0x361   :  { %3188 = vmatpush3.bf16.msra.mxu0 %v3640_v5  ;;  %3011 = vmatprep.mubr.msk.f32.mxu0 %vm3535_vm0, %v3536_v1 }
 0x362   :  { %3189 = vmatprep.subr.bf16.mxu0 %v3534_v0 }
 0x365   :  { %3191 = vmatpush3.bf16.msra.mxu0 %v3660_v11 }
 0x366   :  { %3198 = vmatprep.subr.bf16.mxu0 %v3534_v0 }
 0x433   :  { %v385_v56 = vpop.f32.mrb[2].mxu0 }
 0x434   :  { %v407_v57 = vadd.f32 %v385_v56, %v3680_v14  ;;  %v2991_v58 = vpop.f32.mrb[3].mxu0  ;;  %v390_v60 = vrot.slane %v385_v56, 7  ;;  %v394_v61 = vadd.f32 %v385_v56, %v3690_v21 }
 0x436   :  { %412 = vrot.lane.b32.xlu1 %v407_v57, %s3537_s0  ;;  %v409_v59 = vrot.slane %v407_v57, 7  ;;  %v393_v62 = vadd.f32 %v390_v60, %v3688_v20  ;;  %v2821_v63 = vmul.f32 -1.442695, %v394_v61 }
 0x438   :  { %410 = vrot.lane.b32.xlu0 %v409_v59, %s3537_s0  ;;  %v2820_v2 = vmul.f32 -1.442695, %v393_v62  ;;  %3302 = vpow2.f32 %v2821_v63 }
 0x43a   :  { %3304 = vpow2.f32 %v2820_v2 }
 0x442   :  { %v3303_v3 = vpop.eup %3302 }
 0x443   :  { %v402_v6 = vadd.f32 1.0, %v3303_v3 }
 0x444   :  { %v3305_v4 = vpop.eup %3304 }
 0x445   :  { %v401_v7 = vadd.f32 1.0, %v3305_v4  ;;  %3306 = vrcp.f32 %v402_v6 }
 0x447   :  { %3308 = vrcp.f32 %v401_v7 }
 0x44f   :  { %v3307_v8 = vpop.eup %3306 }
 0x451   :  { %v3309_v12 = vpop.eup %3308 }
 0x4a8   :  { %v413_v9 = vpop.permute.xlu1 %412 }
 0x4a9   :  { %v417_v10 = vmul.f32 %v3307_v8, %v413_v9 }
 0x4aa   :  { %v411_v13 = vpop.permute.xlu0 %410 }
 0x4ab   :  { %v416_v15 = vmul.f32 %v3309_v12, %v411_v13  ;;  %422 = vrot.lane.b32.xlu1 %v417_v10, %s3537_s0 }
 0x4ad   :  { %420 = vrot.lane.b32.xlu0 %v416_v15, %s3537_s0 }
 0x51d   :  { %v423_v16 = vpop.permute.xlu1 %422 }
 0x51e   :  { %v427_v17 = vadd.f32 %v423_v16, %v3690_v21 }
 0x51f   :  { %v421_v18 = vpop.permute.xlu0 %420 }
 0x520   :  { %3310 = vtanh.f32 %v427_v17  ;;  %v426_v19 = vadd.f32 %v421_v18, %v3688_v20 }
 0x522   :  { %3312 = vtanh.f32 %v426_v19 }
 0x52a   :  { %v3311_v22 = vpop.eup %3310 }
 0x52b   :  { %v433_v23 = vrot.slane %v3311_v22, 1 }
 0x52c   :  { %v3313_v24 = vpop.eup %3312 }
 0x52d   :  { %v437_v25 = vsub.f32 %v3702_v51, %v433_v23  ;;  %v432_v26 = vrot.slane %v3313_v24, 1 }
 0x52f   :  { %v441_v27 = vrot.slane %v437_v25, 7  ;;  %v436_v28 = vsub.f32 %v3704_v52, %v432_v26 }
 0x531   :  { %444 = vrot.lane.b32.xlu1 %v441_v27, %s3538_s3  ;;  %v440_v29 = vrot.slane %v436_v28, 7 }
 0x533   :  { %442 = vrot.lane.b32.xlu0 %v440_v29, %s3538_s3 }
 0x5a3   :  { %v445_v30 = vpop.permute.xlu1 %444 }
 0x5a4   :  { %v449_v31 = vmul.f32 %v3307_v8, %v445_v30 }
 0x5a5   :  { %v443_v32 = vpop.permute.xlu0 %442 }
 0x5a6   :  { %v448_v33 = vmul.f32 %v3309_v12, %v443_v32  ;;  %454 = vrot.lane.b32.xlu1 %v449_v31, %s3539_s17 }
 0x5a8   :  { %452 = vrot.lane.b32.xlu0 %v448_v33, %s3539_s17 }
 0x618   :  { %v455_v34 = vpop.permute.xlu1 %454 }
 0x619   :  { %v3734_v37 = vadd.f32 %v3311_v22, %v455_v34 }
 0x61a   :  { %v453_v35 = vpop.permute.xlu0 %452 }
 0x61b   :  { %v3732_v36 = vadd.f32 %v3313_v24, %v453_v35 }
 0x61d   :  { %v462_v38 = vrot.slane %v3732_v36, 1 }
 0x61f   :  { %v463_v39 = vsel %vm313_vm3, %v3734_v37, %v462_v38 }
 0x620   :  { %464 = vrot.lane.b32.xlu0 %v463_v39, %s3537_s0 }
 0x692   :  { %v465_v40 = vpop.permute.xlu0 %464 }
 0x693   :  { %3001 = vmatmul.mubr.msk.f32.vlgmr.msra.gmra.mrb[2].mxu1 %vm170_vm4, %v465_v40 }
 0x694   :  { %3194 = vmatpush3.bf16.msra.mxu1 %v3640_v5  ;;  %3022 = vmatprep.mubr.msk.f32.mxu1 %vm3535_vm0, %v3536_v1 }
 0x695   :  { %3195 = vmatprep.subr.bf16.mxu1 %v3534_v0 }
 0x698   :  { %3197 = vmatpush3.bf16.msra.mxu1 %v3660_v11 }
 0x699   :  { %3204 = vmatprep.subr.bf16.mxu1 %v3534_v0 }
 0x766   :  { %v534_v41 = vpop.f32.mrb[2].mxu1 }
 0x767   :  { %v557_v42 = vadd.f32 %v534_v41, %v3680_v14  ;;  %v3002_v43 = vpop.f32.mrb[3].mxu1  ;;  %v539_v46 = vrot.slane %v534_v41, 6  ;;  %v540_v47 = vrot.slane %v534_v41, 7 }
 0x769   :  { %v560_v44 = vrot.slane %v557_v42, 7  ;;  %v559_v45 = vrot.slane %v557_v42, 6  ;;  %v543_v48 = vadd.f32 %v539_v46, %v3688_v20  ;;  %v544_v49 = vadd.f32 %v540_v47, %v3690_v21 }
 0x76b   :  { %563 = vrot.lane.b32.xlu0 %v560_v44, %s3537_s0  ;;  %561 = vrot.lane.b32.xlu1 %v559_v45, %s3537_s0  ;;  %v2823_v50 = vmul.f32 -1.442695, %v543_v48  ;;  %v2824_v53 = vmul.f32 -1.442695, %v544_v49 }
 0x76d   :  { %3314 = vpow2.f32 %v2823_v50 }
 0x76e   :  { %3316 = vpow2.f32 %v2824_v53 }
 0x777   :  { %v3315_v54 = vpop.eup %3314 }
 0x778   :  { %v3317_v55 = vpop.eup %3316  ;;  %v551_v56 = vadd.f32 1.0, %v3315_v54 }
 0x779   :  { %v552_v57 = vadd.f32 1.0, %v3317_v55 }
 0x77a   :  { %3318 = vrcp.f32 %v551_v56 }
 0x77b   :  { %3320 = vrcp.f32 %v552_v57 }
 0x784   :  { %v3319_v58 = vpop.eup %3318 }
 0x785   :  { %v3321_v59 = vpop.eup %3320 }
 0x7dd   :  { %v564_v60 = vpop.permute.xlu0 %563  ;;  %v562_v61 = vpop.permute.xlu1 %561 }
 0x7de   :  { %v568_v62 = vmul.f32 %v3321_v59, %v564_v60  ;;  %v567_v63 = vmul.f32 %v3319_v58, %v562_v61 }
 0x7e0   :  { %573 = vrot.lane.b32.xlu0 %v568_v62, %s3537_s0  ;;  %571 = vrot.lane.b32.xlu1 %v567_v63, %s3537_s0 }
 0x852   :  { %v574_v2 = vpop.permute.xlu0 %573  ;;  %v572_v3 = vpop.permute.xlu1 %571 }
 0x853   :  { %v578_v4 = vadd.f32 %v574_v2, %v3690_v21  ;;  %v577_v6 = vadd.f32 %v572_v3, %v3688_v20 }
 0x855   :  { %3322 = vtanh.f32 %v578_v4 }
 0x856   :  { %3324 = vtanh.f32 %v577_v6 }
 0x85f   :  { %v3323_v7 = vpop.eup %3322 }
 0x860   :  { %v3325_v8 = vpop.eup %3324  ;;  %v584_v9 = vrot.slane %v3323_v7, 1 }
 0x861   :  { %v583_v10 = vrot.slane %v3325_v8, 1 }
 0x862   :  { %v588_v12 = vsub.f32 %v3734_v37, %v584_v9 }
 0x863   :  { %v587_v13 = vsub.f32 %v3732_v36, %v583_v10 }
 0x864   :  { %v592_v15 = vrot.slane %v588_v12, 7 }
 0x865   :  { %v591_v16 = vrot.slane %v587_v13, 7 }
 0x866   :  { %595 = vrot.lane.b32.xlu0 %v592_v15, %s3538_s3 }
 0x867   :  { %593 = vrot.lane.b32.xlu1 %v591_v16, %s3538_s3 }
 0x8d8   :  { %v596_v17 = vpop.permute.xlu0 %595 }
 0x8d9   :  { %v600_v18 = vmul.f32 %v3321_v59, %v596_v17  ;;  %v594_v19 = vpop.permute.xlu1 %593 }
 0x8da   :  { %v599_v22 = vmul.f32 %v3319_v58, %v594_v19 }
 0x8db   :  { %605 = vrot.lane.b32.xlu0 %v600_v18, %s3539_s17 }
 0x8dc   :  { %603 = vrot.lane.b32.xlu1 %v599_v22, %s3539_s17 }
 0x94d   :  { %v606_v23 = vpop.permute.xlu0 %605 }
 0x94e   :  { %v3762_v24 = vadd.f32 %v3323_v7, %v606_v23  ;;  %v604_v25 = vpop.permute.xlu1 %603 }
 0x94f   :  { %v3764_v26 = vadd.f32 %v3325_v8, %v604_v25 }
 0x950   :  { %v614_v27 = vrot.slane %v3762_v24, 1 }
 0x951   :  { %v613_v28 = vrot.slane %v3764_v26, 2 }
 0x953   :  { %v615_v29 = vsel %vm313_vm3, %v614_v27, %v613_v28 }
 0x954   :  { %616 = vrot.lane.b32.xlu1 %v615_v29, %s3537_s0 }
 0x9c6   :  { %v617_v30 = vpop.permute.xlu1 %616 }
 0x9c7   :  { %3012 = vmatmul.mubr.msk.f32.vlgmr.msra.gmra.mrb[4].mxu0 %vm170_vm4, %v617_v30 }
 0x9c8   :  { %3200 = vmatpush3.bf16.msra.mxu0 %v3640_v5  ;;  %3033 = vmatprep.mubr.msk.f32.mxu0 %vm3535_vm0, %v3536_v1 }
 0x9c9   :  { %3201 = vmatprep.subr.bf16.mxu0 %v3534_v0 }
 0x9cc   :  { %3203 = vmatpush3.bf16.msra.mxu0 %v3660_v11 }
 0x9cd   :  { %3210 = vmatprep.subr.bf16.mxu0 %v3534_v0 }
 0xa9a   :  { %v686_v31 = vpop.f32.mrb[4].mxu0 }
 0xa9b   :  { %v709_v32 = vadd.f32 %v686_v31, %v3680_v14  ;;  %v3013_v33 = vpop.f32.mrb[5].mxu0  ;;  %v691_v38 = vrot.slane %v686_v31, 5  ;;  %v692_v39 = vrot.slane %v686_v31, 6 }
 0xa9d   :  { %v712_v34 = vrot.slane %v709_v32, 6  ;;  %v711_v35 = vrot.slane %v709_v32, 5  ;;  %v695_v40 = vadd.f32 %v691_v38, %v3688_v20  ;;  %v696_v41 = vadd.f32 %v692_v39, %v3690_v21 }
 0xa9f   :  { %715 = vrot.lane.b32.xlu1 %v712_v34, %s3537_s0  ;;  %713 = vrot.lane.b32.xlu0 %v711_v35, %s3537_s0  ;;  %v2826_v42 = vmul.f32 -1.442695, %v695_v40  ;;  %v2827_v43 = vmul.f32 -1.442695, %v696_v41 }
 0xaa1   :  { %3326 = vpow2.f32 %v2826_v42 }
 0xaa2   :  { %3328 = vpow2.f32 %v2827_v43 }
 0xaab   :  { %v3327_v44 = vpop.eup %3326 }
 0xaac   :  { %v3329_v45 = vpop.eup %3328  ;;  %v703_v46 = vadd.f32 1.0, %v3327_v44 }
 0xaad   :  { %v704_v47 = vadd.f32 1.0, %v3329_v45 }
 0xaae   :  { %3330 = vrcp.f32 %v703_v46 }
 0xaaf   :  { %3332 = vrcp.f32 %v704_v47 }
 0xab8   :  { %v3331_v48 = vpop.eup %3330 }
 0xab9   :  { %v3333_v49 = vpop.eup %3332 }
 0xb11   :  { %v716_v50 = vpop.permute.xlu1 %715  ;;  %v714_v53 = vpop.permute.xlu0 %713 }
 0xb12   :  { %v720_v54 = vmul.f32 %v3333_v49, %v716_v50  ;;  %v719_v55 = vmul.f32 %v3331_v48, %v714_v53 }
 0xb14   :  { %725 = vrot.lane.b32.xlu1 %v720_v54, %s3537_s0  ;;  %723 = vrot.lane.b32.xlu0 %v719_v55, %s3537_s0 }
 0xb86   :  { %v726_v56 = vpop.permute.xlu1 %725  ;;  %v724_v57 = vpop.permute.xlu0 %723 }
 0xb87   :  { %v730_v58 = vadd.f32 %v726_v56, %v3690_v21  ;;  %v729_v59 = vadd.f32 %v724_v57, %v3688_v20 }
 0xb89   :  { %3334 = vtanh.f32 %v730_v58 }
 0xb8a   :  { %3336 = vtanh.f32 %v729_v59 }
 0xb93   :  { %v3335_v60 = vpop.eup %3334 }
 0xb94   :  { %v3337_v61 = vpop.eup %3336  ;;  %v736_v62 = vrot.slane %v3335_v60, 1 }
 0xb95   :  { %v735_v63 = vrot.slane %v3337_v61, 1 }
 0xb96   :  { %v740_v2 = vsub.f32 %v3762_v24, %v736_v62 }
 0xb97   :  { %v739_v3 = vsub.f32 %v3764_v26, %v735_v63 }
 0xb98   :  { %v744_v4 = vrot.slane %v740_v2, 7 }
 0xb99   :  { %v743_v6 = vrot.slane %v739_v3, 7 }
 0xb9a   :  { %747 = vrot.lane.b32.xlu1 %v744_v4, %s3538_s3 }
 0xb9b   :  { %745 = vrot.lane.b32.xlu0 %v743_v6, %s3538_s3 }
 0xc0c   :  { %v748_v7 = vpop.permute.xlu1 %747 }
 0xc0d   :  { %v752_v8 = vmul.f32 %v3333_v49, %v748_v7  ;;  %v746_v9 = vpop.permute.xlu0 %745 }
 0xc0e   :  { %v751_v10 = vmul.f32 %v3331_v48, %v746_v9 }
 0xc0f   :  { %757 = vrot.lane.b32.xlu1 %v752_v8, %s3539_s17 }
 0xc10   :  { %755 = vrot.lane.b32.xlu0 %v751_v10, %s3539_s17 }
 0xc81   :  { %v758_v12 = vpop.permute.xlu1 %757 }
 0xc82   :  { %v3792_v13 = vadd.f32 %v3335_v60, %v758_v12  ;;  %v756_v15 = vpop.permute.xlu0 %755 }
 0xc83   :  { %v3794_v16 = vadd.f32 %v3337_v61, %v756_v15 }
 0xc84   :  { %v766_v17 = vrot.slane %v3792_v13, 2 }
 0xc85   :  { %v765_v18 = vrot.slane %v3794_v16, 3 }
 0xc87   :  { %v767_v19 = vsel %vm313_vm3, %v766_v17, %v765_v18 }
 0xc88   :  { %768 = vrot.lane.b32.xlu0 %v767_v19, %s3537_s0 }
 0xcfa   :  { %v769_v22 = vpop.permute.xlu0 %768 }
 0xcfb   :  { %3023 = vmatmul.mubr.msk.f32.vlgmr.msra.gmra.mrb[4].mxu1 %vm170_vm4, %v769_v22 }
 0xcfc   :  { %3206 = vmatpush3.bf16.msra.mxu1 %v3640_v5  ;;  %3044 = vmatprep.mubr.msk.f32.mxu1 %vm3535_vm0, %v3536_v1 }
 0xcfd   :  { %3207 = vmatprep.subr.bf16.mxu1 %v3534_v0 }
 0xd00   :  { %3209 = vmatpush3.bf16.msra.mxu1 %v3660_v11 }
 0xdce   :  { %v838_v23 = vpop.f32.mrb[4].mxu1 }
 0xdcf   :  { %v861_v25 = vadd.f32 %v838_v23, %v3680_v14  ;;  %v3024_v27 = vpop.f32.mrb[5].mxu1  ;;  %v843_v30 = vrot.slane %v838_v23, 4  ;;  %v844_v31 = vrot.slane %v838_v23, 5 }
 0xdd1   :  { %v864_v28 = vrot.slane %v861_v25, 5  ;;  %v863_v29 = vrot.slane %v861_v25, 4  ;;  %v847_v32 = vadd.f32 %v843_v30, %v3688_v20  ;;  %v848_v33 = vadd.f32 %v844_v31, %v3690_v21 }
 0xdd3   :  { %867 = vrot.lane.b32.xlu0 %v864_v28, %s3537_s0  ;;  %865 = vrot.lane.b32.xlu1 %v863_v29, %s3537_s0  ;;  %v2829_v34 = vmul.f32 -1.442695, %v847_v32  ;;  %v2830_v35 = vmul.f32 -1.442695, %v848_v33 }
 0xdd5   :  { %3338 = vpow2.f32 %v2829_v34 }
 0xdd6   :  { %3340 = vpow2.f32 %v2830_v35 }
 0xddf   :  { %v3339_v38 = vpop.eup %3338 }
 0xde0   :  { %v3341_v39 = vpop.eup %3340  ;;  %v855_v40 = vadd.f32 1.0, %v3339_v38 }
 0xde1   :  { %v856_v41 = vadd.f32 1.0, %v3341_v39 }
 0xde2   :  { %3342 = vrcp.f32 %v855_v40 }
 0xde3   :  { %3344 = vrcp.f32 %v856_v41 }
 0xdec   :  { %v3343_v42 = vpop.eup %3342 }
 0xded   :  { %v3345_v43 = vpop.eup %3344 }
 0xe45   :  { %v868_v44 = vpop.permute.xlu0 %867  ;;  %v866_v45 = vpop.permute.xlu1 %865 }
 0xe46   :  { %v872_v46 = vmul.f32 %v3345_v43, %v868_v44  ;;  %v871_v47 = vmul.f32 %v3343_v42, %v866_v45 }
 0xe48   :  { %877 = vrot.lane.b32.xlu0 %v872_v46, %s3537_s0  ;;  %875 = vrot.lane.b32.xlu1 %v871_v47, %s3537_s0 }
 0xeba   :  { %v878_v48 = vpop.permute.xlu0 %877  ;;  %v876_v49 = vpop.permute.xlu1 %875 }
 0xebb   :  { %v882_v50 = vadd.f32 %v878_v48, %v3690_v21  ;;  %v881_v53 = vadd.f32 %v876_v49, %v3688_v20 }
 0xebd   :  { %3346 = vtanh.f32 %v882_v50 }
 0xebe   :  { %3348 = vtanh.f32 %v881_v53 }
 0xec7   :  { %v3347_v54 = vpop.eup %3346 }
 0xec8   :  { %v3349_v55 = vpop.eup %3348  ;;  %v888_v56 = vrot.slane %v3347_v54, 1 }
 0xec9   :  { %v887_v57 = vrot.slane %v3349_v55, 1 }
 0xeca   :  { %v892_v58 = vsub.f32 %v3792_v13, %v888_v56 }
 0xecb   :  { %v891_v59 = vsub.f32 %v3794_v16, %v887_v57 }
 0xecc   :  { %v896_v60 = vrot.slane %v892_v58, 7 }
 0xecd   :  { %v895_v61 = vrot.slane %v891_v59, 7 }
 0xece   :  { %899 = vrot.lane.b32.xlu0 %v896_v60, %s3538_s3 }
 0xecf   :  { %897 = vrot.lane.b32.xlu1 %v895_v61, %s3538_s3 }
 0xf40   :  { %v900_v62 = vpop.permute.xlu0 %899 }
 0xf41   :  { %v904_v63 = vmul.f32 %v3345_v43, %v900_v62  ;;  %v898_v2 = vpop.permute.xlu1 %897 }
 0xf42   :  { %v903_v3 = vmul.f32 %v3343_v42, %v898_v2 }
 0xf43   :  { %909 = vrot.lane.b32.xlu0 %v904_v63, %s3539_s17 }
 0xf44   :  { %907 = vrot.lane.b32.xlu1 %v903_v3, %s3539_s17 }
 0xfb5   :  { %v910_v4 = vpop.permute.xlu0 %909 }
 0xfb6   :  { %v3821_v6 = vadd.f32 %v3347_v54, %v910_v4  ;;  %v908_v7 = vpop.permute.xlu1 %907 }
 0xfb7   :  { %v3823_v8 = vadd.f32 %v3349_v55, %v908_v7 }
 0xfb8   :  { %v918_v9 = vrot.slane %v3821_v6, 3 }
 0xfb9   :  { %v917_v10 = vrot.slane %v3823_v8, 4 }
 0xfbb   :  { %v919_v12 = vsel %vm313_vm3, %v918_v9, %v917_v10 }
 0xfbc   :  { %920 = vrot.lane.b32.xlu1 %v919_v12, %s3537_s0 }
0x102e   :  { %v921_v15 = vpop.permute.xlu1 %920 }
0x102f   :  { %3034 = vmatmul.mubr.msk.f32.vlgmr.msra.gmra.mrb[6].mxu0 %vm170_vm4, %v921_v15 }
0x1030   :  { %3212 = vmatpush3.bf16.msra.mxu0 %v3640_v5  ;;  %3055 = vmatprep.mubr.msk.f32.mxu0 %vm3535_vm0, %v3536_v1 }
0x1031   :  { %3213 = vmatprep.subr.bf16.mxu0 %v3534_v0 }
0x1034   :  { %3215 = vmatpush3.bf16.msra.mxu0 %v3660_v11 }
0x1035   :  { %3224 = vmatprep.subr.bf16.mxu0 %v3534_v0 }
0x1102   :  { %v990_v17 = vpop.f32.mrb[6].mxu0 }
0x1103   :  { %v1013_v18 = vadd.f32 %v990_v17, %v3680_v14  ;;  %v3035_v19 = vpop.f32.mrb[7].mxu0  ;;  %v995_v5 = vrot.slane %v990_v17, 3  ;;  %v996_v25 = vrot.slane %v990_v17, 4 }
0x1105   :  { %v1016_v22 = vrot.slane %v1013_v18, 4  ;;  %v1015_v23 = vrot.slane %v1013_v18, 3  ;;  %v999_v27 = vadd.f32 %v995_v5, %v3688_v20  ;;  %v1000_v28 = vadd.f32 %v996_v25, %v3690_v21 }
0x1107   :  { %1019 = vrot.lane.b32.xlu1 %v1016_v22, %s3537_s0  ;;  %1017 = vrot.lane.b32.xlu0 %v1015_v23, %s3537_s0  ;;  %v2832_v29 = vmul.f32 -1.442695, %v999_v27  ;;  %v2833_v11 = vmul.f32 -1.442695, %v1000_v28 }
0x1109   :  { %3350 = vpow2.f32 %v2832_v29 }
0x110a   :  { %3352 = vpow2.f32 %v2833_v11 }
0x1113   :  { %v3351_v30 = vpop.eup %3350 }
0x1114   :  { %v3353_v31 = vpop.eup %3352  ;;  %v1007_v32 = vadd.f32 1.0, %v3351_v30 }
0x1115   :  { %v1008_v33 = vadd.f32 1.0, %v3353_v31 }
0x1116   :  { %3354 = vrcp.f32 %v1007_v32 }
0x1117   :  { %3356 = vrcp.f32 %v1008_v33 }
0x1120   :  { %v3355_v34 = vpop.eup %3354 }
0x1121   :  { %v3357_v35 = vpop.eup %3356 }
0x1179   :  { %v1020_v38 = vpop.permute.xlu1 %1019  ;;  %v1018_v39 = vpop.permute.xlu0 %1017 }
0x117a   :  { %v1024_v40 = vmul.f32 %v3357_v35, %v1020_v38  ;;  %v1023_v41 = vmul.f32 %v3355_v34, %v1018_v39 }
0x117c   :  { %1029 = vrot.lane.b32.xlu1 %v1024_v40, %s3537_s0  ;;  %1027 = vrot.lane.b32.xlu0 %v1023_v41, %s3537_s0 }
0x11ee   :  { %v1030_v42 = vpop.permute.xlu1 %1029  ;;  %v1028_v43 = vpop.permute.xlu0 %1027 }
0x11ef   :  { %v1034_v44 = vadd.f32 %v1030_v42, %v3690_v21  ;;  %v1033_v45 = vadd.f32 %v1028_v43, %v3688_v20 }
0x11f1   :  { %3358 = vtanh.f32 %v1034_v44 }
0x11f2   :  { %3360 = vtanh.f32 %v1033_v45 }
0x11fb   :  { %v3359_v46 = vpop.eup %3358 }
0x11fc   :  { %v3361_v47 = vpop.eup %3360  ;;  %v1040_v48 = vrot.slane %v3359_v46, 1 }
0x11fd   :  { %v1039_v49 = vrot.slane %v3361_v47, 1 }
0x11fe   :  { %v1044_v50 = vsub.f32 %v3821_v6, %v1040_v48 }
0x11ff   :  { %v1043_v53 = vsub.f32 %v3823_v8, %v1039_v49 }
0x1200   :  { %v1048_v54 = vrot.slane %v1044_v50, 7 }
0x1201   :  { %v1047_v55 = vrot.slane %v1043_v53, 7 }
0x1202   :  { %1051 = vrot.lane.b32.xlu1 %v1048_v54, %s3538_s3 }
0x1203   :  { %1049 = vrot.lane.b32.xlu0 %v1047_v55, %s3538_s3 }
0x1274   :  { %v1052_v56 = vpop.permute.xlu1 %1051 }
0x1275   :  { %v1056_v57 = vmul.f32 %v3357_v35, %v1052_v56  ;;  %v1050_v58 = vpop.permute.xlu0 %1049 }
0x1276   :  { %v1055_v59 = vmul.f32 %v3355_v34, %v1050_v58 }
0x1277   :  { %1061 = vrot.lane.b32.xlu1 %v1056_v57, %s3539_s17 }
0x1278   :  { %1059 = vrot.lane.b32.xlu0 %v1055_v59, %s3539_s17 }
0x12e9   :  { %v1062_v60 = vpop.permute.xlu1 %1061 }
0x12ea   :  { %v3851_v61 = vadd.f32 %v3359_v46, %v1062_v60  ;;  %v1060_v62 = vpop.permute.xlu0 %1059 }
0x12eb   :  { %v3853_v63 = vadd.f32 %v3361_v47, %v1060_v62 }
0x12ec   :  { %v1070_v2 = vrot.slane %v3851_v61, 4 }
0x12ed   :  { %v1069_v3 = vrot.slane %v3853_v63, 5 }
0x12ef   :  { %v1071_v4 = vsel %vm313_vm3, %v1070_v2, %v1069_v3 }
0x12f0   :  { %1072 = vrot.lane.b32.xlu0 %v1071_v4, %s3537_s0 }
0x1362   :  { %v1073_v7 = vpop.permute.xlu0 %1072 }
0x1363   :  { %3045 = vmatmul.mubr.msk.f32.vlgmr.msra.gmra.mrb[6].mxu1 %vm170_vm4, %v1073_v7 }
0x1436   :  { %v1142_v9 = vpop.f32.mrb[6].mxu1 }
0x1437   :  { %v1165_v10 = vadd.f32 %v1142_v9, %v3680_v14  ;;  %v3046_v12 = vpop.f32.mrb[7].mxu1  ;;  %v1147_v18 = vrot.slane %v1142_v9, 2  ;;  %v1148_v19 = vrot.slane %v1142_v9, 3 }
0x1439   :  { %v1168_v15 = vrot.slane %v1165_v10, 3  ;;  %v1167_v17 = vrot.slane %v1165_v10, 2  ;;  %v1151_v22 = vadd.f32 %v1147_v18, %v3688_v20  ;;  %v1152_v23 = vadd.f32 %v1148_v19, %v3690_v21 }
0x143b   :  { %1171 = vrot.lane.b32.xlu0 %v1168_v15, %s3537_s0  ;;  %1169 = vrot.lane.b32.xlu1 %v1167_v17, %s3537_s0  ;;  %v2835_v5 = vmul.f32 -1.442695, %v1151_v22  ;;  %v2836_v25 = vmul.f32 -1.442695, %v1152_v23 }
0x143d   :  { %3362 = vpow2.f32 %v2835_v5 }
0x143e   :  { %3364 = vpow2.f32 %v2836_v25 }
0x1447   :  { %v3363_v27 = vpop.eup %3362 }
0x1448   :  { %v3365_v28 = vpop.eup %3364  ;;  %v1159_v29 = vadd.f32 1.0, %v3363_v27 }
0x1449   :  { %v1160_v11 = vadd.f32 1.0, %v3365_v28 }
0x144a   :  { %3366 = vrcp.f32 %v1159_v29 }
0x144b   :  { %3368 = vrcp.f32 %v1160_v11 }
0x1454   :  { %v3367_v30 = vpop.eup %3366 }
0x1455   :  { %v3369_v31 = vpop.eup %3368 }
0x14ad   :  { %v1172_v32 = vpop.permute.xlu0 %1171  ;;  %v1170_v33 = vpop.permute.xlu1 %1169 }
0x14ae   :  { %v1176_v34 = vmul.f32 %v3369_v31, %v1172_v32  ;;  %v1175_v35 = vmul.f32 %v3367_v30, %v1170_v33 }
0x14b0   :  { %1181 = vrot.lane.b32.xlu0 %v1176_v34, %s3537_s0  ;;  %1179 = vrot.lane.b32.xlu1 %v1175_v35, %s3537_s0 }
0x1522   :  { %v1182_v38 = vpop.permute.xlu0 %1181  ;;  %v1180_v39 = vpop.permute.xlu1 %1179 }
0x1523   :  { %v1186_v40 = vadd.f32 %v1182_v38, %v3690_v21  ;;  %v1185_v41 = vadd.f32 %v1180_v39, %v3688_v20 }
0x1525   :  { %3370 = vtanh.f32 %v1186_v40 }
0x1526   :  { %3372 = vtanh.f32 %v1185_v41 }
0x152f   :  { %v3371_v42 = vpop.eup %3370 }
0x1530   :  { %v3373_v43 = vpop.eup %3372  ;;  %v1192_v44 = vrot.slane %v3371_v42, 1 }
0x1531   :  { %v1191_v45 = vrot.slane %v3373_v43, 1 }
0x1532   :  { %v1196_v46 = vsub.f32 %v3851_v61, %v1192_v44 }
0x1533   :  { %v1195_v47 = vsub.f32 %v3853_v63, %v1191_v45 }
0x1534   :  { %v1200_v48 = vrot.slane %v1196_v46, 7 }
0x1535   :  { %v1199_v49 = vrot.slane %v1195_v47, 7  ;;  %v1395_v47 = vld [vmem:[#allocation4] sm:$0xff] }
0x1536   :  { %1203 = vrot.lane.b32.xlu0 %v1200_v48, %s3538_s3  ;;  %v1397_v48 = vld [vmem:[#allocation4 + $0x10] sm:$0xff] }
0x1537   :  { %1201 = vrot.lane.b32.xlu1 %v1199_v49, %s3538_s3  ;;  %v1398_v49 = vld [vmem:[#allocation4 + $0x18] sm:$0xff] }
0x15a8   :  { %v1204_v50 = vpop.permute.xlu0 %1203 }
0x15a9   :  { %v1208_v53 = vmul.f32 %v3369_v31, %v1204_v50  ;;  %v1202_v54 = vpop.permute.xlu1 %1201  ;;  %v1391_v50 = vld [vmem:[%s4247_s5] sm:$0xff] }
0x15aa   :  { %v1207_v55 = vmul.f32 %v3367_v30, %v1202_v54 }
0x15ab   :  { %1213 = vrot.lane.b32.xlu0 %v1208_v53, %s3539_s17  ;;  %v1392_v53 = vld [vmem:[%s4247_s5 + $0x8] sm:$0xff] }
0x15ac   :  { %1211 = vrot.lane.b32.xlu1 %v1207_v55, %s3539_s17  ;;  %v3216_v54 = vpack.c.bf16 %v1392_v53, %v1391_v50  ;;  %v1393_v55 = vld [vmem:[%s4247_s5 + $0x10] sm:$0xff] }
0x15ae   :  { %3217 = vmatprep.subr.bf16.mxu1 %v3216_v54 }
0x15af   :  { %3219 = vmatpush3.bf16.msra.mxu1 %v3216_v54 }
0x161d   :  { %v1214_v56 = vpop.permute.xlu0 %1213 }
0x161e   :  { %v3875_v57 = vadd.f32 %v3371_v42, %v1214_v56  ;;  %v1212_v58 = vpop.permute.xlu1 %1211  ;;  %v1394_v56 = vld [vmem:[%s4247_s5 + $0x18] sm:$0xff] }
0x161f   :  { %v3877_v59 = vadd.f32 %v3373_v43, %v1212_v58  ;;  %v3914_v58 = vpack.c.bf16 %v1398_v49, %v1397_v48 }
0x1620   :  { %v1222_v60 = vrot.slane %v3875_v57, 5 }
0x1621   :  { %v1221_v62 = vrot.slane %v3877_v59, 6 }
0x1623   :  { %v1223_v2 = vsel %vm313_vm3, %v1222_v60, %v1221_v62  ;;  %v3220_v60 = vpack.c.bf16 %v1394_v56, %v1393_v55 }
0x1624   :  { %1224 = vrot.lane.b32.xlu1 %v1223_v2, %s3537_s0 }
0x1625   :  { %3221 = vmatprep.subr.bf16.mxu1 %v3220_v60 }
0x1626   :  { %3223 = vmatpush3.bf16.msra.mxu1 %v3220_v60 }
0x1627   :  { %3230 = vmatprep.subr.bf16.mxu1 %v3534_v0 }
0x1696   :  { %v1225_v3 = vpop.permute.xlu1 %1224 }
0x1697   :  { %3056 = vmatmul.mubr.msk.f32.vlgmr.msra.gmra.mrb[8].mxu0 %vm170_vm4, %v1225_v3 }
0x1698   :  { %3077 = vmatprep.mubr.msk.f32.mxu0 %vm3535_vm0, %v3536_v1 }
0x176a   :  { %v1294_v4 = vpop.f32.mrb[8].mxu0 }
0x176b   :  { %v1317_v7 = vadd.f32 %v1294_v4, %v3680_v14  ;;  %v3057_v9 = vpop.f32.mrb[9].mxu0  ;;  %v1299_v15 = vrot.slane %v1294_v4, 1  ;;  %v1300_v17 = vrot.slane %v1294_v4, 2 }
0x176c   :  { %v1372_v9 = vsel %vm1371_vm5, %v3704_v52, %v3732_v36 }
0x176d   :  { %v1320_v10 = vrot.slane %v1317_v7, 2  ;;  %v1319_v12 = vrot.slane %v1317_v7, 1  ;;  %v1303_v18 = vadd.f32 %v1299_v15, %v3688_v20  ;;  %v1304_v19 = vadd.f32 %v1300_v17, %v3690_v21 }
0x176e   :  { %v1373_v7 = vsel %vm1371_vm5, %v3702_v51, %v3734_v37 }
0x176f   :  { %1323 = vrot.lane.b32.xlu1 %v1320_v10, %s3537_s0  ;;  %1321 = vrot.lane.b32.xlu0 %v1319_v12, %s3537_s0  ;;  %v2838_v22 = vmul.f32 -1.442695, %v1303_v18  ;;  %v2839_v23 = vmul.f32 -1.442695, %v1304_v19  ;;  %v1376_v10 = vsel %vm1374_vm6, %v1373_v7, %v3762_v24  ;;  %v1375_v12 = vsel %vm1374_vm6, %v1372_v9, %v3764_v26 }
0x1770   :  { %v1379_v15 = vsel %vm1377_vm7, %v1376_v10, %v3792_v13  ;;  %v1378_v17 = vsel %vm1377_vm7, %v1375_v12, %v3794_v16 }
0x1771   :  { %3374 = vpow2.f32 %v2838_v22  ;;  %v1381_v51 = vsel %vm86_vm1, %v1379_v15, %v3821_v6  ;;  %v1380_v52 = vsel %vm86_vm1, %v1378_v17, %v3823_v8 }
0x1772   :  { %3376 = vpow2.f32 %v2839_v23  ;;  %v1384_v36 = vsel %vm1382_vm8, %v1381_v51, %v3851_v61  ;;  %v1383_v13 = vsel %vm1382_vm8, %v1380_v52, %v3853_v63  ;;  %v2843_v61 = vld [vmem:[%s4250_s8] ss:$0 sm:$0xff] }
0x1773   :  { %v1387_v16 = vsel %vm1385_vm9, %v1384_v36, %v3875_v57  ;;  %v1386_v6 = vsel %vm1385_vm9, %v1383_v13, %v3877_v59 }
0x177b   :  { %v3375_v5 = vpop.eup %3374 }
0x177c   :  { %v3377_v25 = vpop.eup %3376  ;;  %v1311_v14 = vadd.f32 1.0, %v3375_v5 }
0x177d   :  { %v1312_v27 = vadd.f32 1.0, %v3377_v25 }
0x177e   :  { %3378 = vrcp.f32 %v1311_v14  ;;  %v2840_v14 = vld [vmem:[%s4249_s7] ss:$0 sm:$0xff] }
0x177f   :  { %3380 = vrcp.f32 %v1312_v27 }
0x1788   :  { %v3379_v28 = vpop.eup %3378 }
0x1789   :  { %v3381_v29 = vpop.eup %3380 }
0x17e1   :  { %v1324_v11 = vpop.permute.xlu1 %1323  ;;  %v1322_v30 = vpop.permute.xlu0 %1321 }
0x17e2   :  { %v1328_v31 = vmul.f32 %v3381_v29, %v1324_v11  ;;  %v1327_v32 = vmul.f32 %v3379_v28, %v1322_v30 }
0x17e4   :  { %1333 = vrot.lane.b32.xlu1 %v1328_v31, %s3537_s0  ;;  %1331 = vrot.lane.b32.xlu0 %v1327_v32, %s3537_s0 }
0x1856   :  { %v1334_v33 = vpop.permute.xlu1 %1333  ;;  %v1332_v34 = vpop.permute.xlu0 %1331 }
0x1857   :  { %v1338_v35 = vadd.f32 %v1334_v33, %v3690_v21  ;;  %v1337_v38 = vadd.f32 %v1332_v34, %v3688_v20  ;;  %v1396_v21 = vld [vmem:[#allocation4 + $0x8] sm:$0xff] }
0x1858   :  { %v3899_v20 = vpack.c.bf16 %v1396_v21, %v1395_v47 }
0x1859   :  { %3382 = vtanh.f32 %v1338_v35 }
0x185a   :  { %3384 = vtanh.f32 %v1337_v38  ;;  %3226 = vmatpush3.bf16.msra.mxu0 %v3899_v20 }
0x185b   :  { %3227 = vmatprep.subr.bf16.mxu0 %v3534_v0 }
0x185e   :  { %3229 = vmatpush3.bf16.msra.mxu0 %v3914_v58 }
0x185f   :  { %3236 = vmatprep.subr.bf16.mxu0 %v3534_v0 }
0x1861   :  { %3078 = vmatmul.mubr.f32.vlgmr.msra.gmra.mrb[10].mxu0 %v3536_v1 }
0x1862   :  { %3238 = vmatpush3.bf16.msra.mxu0 %v3899_v20  ;;  %3099 = vmatprep.mubr.msk.f32.mxu0 %vm3535_vm0, %v3536_v1 }
0x1863   :  { %v3383_v39 = vpop.eup %3382  ;;  %3239 = vmatprep.subr.bf16.mxu0 %v3534_v0 }
0x1864   :  { %v3385_v40 = vpop.eup %3384  ;;  %v1344_v41 = vrot.slane %v3383_v39, 1 }
0x1865   :  { %v1343_v42 = vrot.slane %v3385_v40, 1 }
0x1866   :  { %v1348_v43 = vsub.f32 %v3875_v57, %v1344_v41  ;;  %3241 = vmatpush3.bf16.msra.mxu0 %v3914_v58 }
0x1867   :  { %v1347_v44 = vsub.f32 %v3877_v59, %v1343_v42  ;;  %3248 = vmatprep.subr.bf16.mxu0 %v3534_v0 }
0x1868   :  { %v1352_v45 = vrot.slane %v1348_v43, 7 }
0x1869   :  { %v1351_v46 = vrot.slane %v1347_v44, 7 }
0x186a   :  { %1355 = vrot.lane.b32.xlu1 %v1352_v45, %s3538_s3 }
0x186b   :  { %1353 = vrot.lane.b32.xlu0 %v1351_v46, %s3538_s3 }
0x18dc   :  { %v1356_v62 = vpop.permute.xlu1 %1355 }
0x18dd   :  { %v1360_v2 = vmul.f32 %v3381_v29, %v1356_v62  ;;  %v1354_v3 = vpop.permute.xlu0 %1353 }
0x18de   :  { %v1359_v4 = vmul.f32 %v3379_v28, %v1354_v3 }
0x18df   :  { %1365 = vrot.lane.b32.xlu1 %v1360_v2, %s3539_s17 }
0x18e0   :  { %1363 = vrot.lane.b32.xlu0 %v1359_v4, %s3539_s17 }
0x1934   :  { %v1563_v63 = vpop.f32.mrb[10].mxu0 }
0x1935   :  { %v3079_v22 = vpop.f32.mrb[11].mxu0  ;;  %v1568_v28 = vrot.slane %v1563_v63, 1 }
0x1951   :  { %v1366_v37 = vpop.permute.xlu1 %1365 }
0x1952   :  { %v1370_v24 = vadd.f32 %v3383_v39, %v1366_v37  ;;  %v1364_v26 = vpop.permute.xlu0 %1363 }
0x1953   :  { %v1369_v18 = vadd.f32 %v3385_v40, %v1364_v26 }
0x1954   :  { %v1390_v19 = vsel %vm1388_vm10, %v1387_v16, %v1370_v24 }
0x1955   :  { %1411 = vrot.lane.b32.xlu1 %v1390_v19, %s3537_s0  ;;  %v1389_v8 = vsel %vm1388_vm10, %v1386_v6, %v1369_v18 }
0x1956   :  { %1409 = vrot.lane.b32.xlu0 %v1389_v8, %s3537_s0 }
0x195a   :  { %1585 = vrot.lane.b32.xlu0 %v2843_v61, %s3537_s0 }
0x19c7   :  { %v1412_v57 = vpop.permute.xlu1 %1411 }
0x19c8   :  { %v1410_v23 = vpop.permute.xlu0 %1409 }
0x19c9   :  { %3066 = vmatprep.mubr.msk.f32.mxu1 %vm170_vm4, %v1410_v23 }
0x19ca   :  { %3067 = vmatmul.mubr.msk.f32.vlgmr.msra.gmra.mrb[8].mxu1 %vm170_vm4, %v1412_v57 }
0x19cb   :  { %3232 = vmatpush3.bf16.msra.mxu1 %v3899_v20  ;;  %3088 = vmatprep.mubr.msk.f32.mxu1 %vm3535_vm0, %v3536_v1 }
0x19cc   :  { %v3968_v59 = vpop.permute.xlu0 %1585  ;;  %3233 = vmatprep.subr.bf16.mxu1 %v3534_v0 }
0x19cd   :  { %v1588_v5 = vadd.f32 %v3968_v59, %v1563_v63 }
0x19cf   :  { %1591 = vrot.lane.b32.xlu0 %v1588_v5, %s3537_s0  ;;  %v1590_v25 = vrot.slane %v1588_v5, 1  ;;  %3235 = vmatpush3.bf16.msra.mxu1 %v3914_v58 }
0x19d0   :  { %3242 = vmatprep.subr.bf16.mxu1 %v3534_v0 }
0x19d1   :  { %1593 = vrot.lane.b32.xlu1 %v1590_v25, %s3537_s0 }
0x1a41   :  { %v1592_v44 = vpop.permute.xlu0 %1591 }
0x1a43   :  { %v1594_v41 = vpop.permute.xlu1 %1593 }
0x1a9d   :  { %v3068_v27 = vpop.f32.mrb[8].mxu1 }
0x1a9e   :  { %v3979_v29 = vadd.f32 %v3068_v27, %v2840_v14  ;;  %v1483_v11 = vpop.f32.mrb[9].mxu1 }
0x1a9f   :  { %v3981_v30 = vadd.f32 %v2840_v14, %v1483_v11 }
0x1aa0   :  { %v1572_v31 = vadd.f32 %v1568_v28, %v3979_v29 }
0x1aa1   :  { %v1571_v32 = vadd.f32 %v1563_v63, %v3981_v30 }
0x1aa2   :  { %v2845_v33 = vmul.f32 -1.442695, %v1572_v31 }
0x1aa3   :  { %v2844_v34 = vmul.f32 -1.442695, %v1571_v32 }
0x1aa4   :  { %3386 = vpow2.f32 %v2845_v33 }
0x1aa5   :  { %3388 = vpow2.f32 %v2844_v34 }
0x1aae   :  { %v3387_v35 = vpop.eup %3386 }
0x1aaf   :  { %v3389_v38 = vpop.eup %3388  ;;  %v1580_v39 = vadd.f32 1.0, %v3387_v35 }
0x1ab0   :  { %v1579_v40 = vadd.f32 1.0, %v3389_v38 }
0x1ab1   :  { %3390 = vrcp.f32 %v1580_v39 }
0x1ab2   :  { %3392 = vrcp.f32 %v1579_v40 }
0x1abb   :  { %v3391_v42 = vpop.eup %3390 }
0x1abc   :  { %v3393_v43 = vpop.eup %3392  ;;  %v1598_v45 = vmul.f32 %v3391_v42, %v1594_v41 }
0x1abd   :  { %v1597_v46 = vmul.f32 %v3393_v43, %v1592_v44 }
0x1abe   :  { %1603 = vrot.lane.b32.xlu1 %v1598_v45, %s3537_s0 }
0x1abf   :  { %1601 = vrot.lane.b32.xlu0 %v1597_v46, %s3537_s0 }
0x1b30   :  { %v1604_v47 = vpop.permute.xlu1 %1603 }
0x1b31   :  { %v1608_v21 = vadd.f32 %v1604_v47, %v3979_v29  ;;  %v1602_v48 = vpop.permute.xlu0 %1601 }
0x1b32   :  { %v1607_v49 = vadd.f32 %v1602_v48, %v3981_v30 }
0x1b33   :  { %3394 = vtanh.f32 %v1608_v21 }
0x1b34   :  { %3396 = vtanh.f32 %v1607_v49 }
0x1b3d   :  { %v3395_v50 = vpop.eup %3394 }
0x1b3e   :  { %v3397_v53 = vpop.eup %3396  ;;  %v1612_v54 = vsub.f32 0.0, %v3395_v50 }
0x1b3f   :  { %v1611_v55 = vsub.f32 0.0, %v3397_v53 }
0x1b40   :  { %1617 = vrot.lane.b32.xlu1 %v1612_v54, %s3538_s3 }
0x1b41   :  { %1615 = vrot.lane.b32.xlu0 %v1611_v55, %s3538_s3 }
0x1bb2   :  { %v1618_v56 = vpop.permute.xlu1 %1617 }
0x1bb3   :  { %v1622_v60 = vmul.f32 %v3391_v42, %v1618_v56  ;;  %v1616_v62 = vpop.permute.xlu0 %1615 }
0x1bb4   :  { %v1621_v2 = vmul.f32 %v3393_v43, %v1616_v62 }
0x1bb5   :  { %1627 = vrot.lane.b32.xlu1 %v1622_v60, %s3539_s17 }
0x1bb6   :  { %1625 = vrot.lane.b32.xlu0 %v1621_v2, %s3539_s17 }
0x1c27   :  { %v1628_v3 = vpop.permute.xlu1 %1627 }
0x1c28   :  { %v3993_v4 = vadd.f32 %v3395_v50, %v1628_v3  ;;  %v1626_v7 = vpop.permute.xlu0 %1625 }
0x1c29   :  { %v3995_v9 = vadd.f32 %v3397_v53, %v1626_v7 }
0x1c2a   :  { %v1635_v10 = vrot.slane %v3993_v4, 7 }
0x1c2c   :  { %v1636_v12 = vsel %vm313_vm3, %v1635_v10, %v3995_v9 }
0x1c2d   :  { %1637 = vrot.lane.b32.xlu1 %v1636_v12, %s3537_s0 }
0x1c9f   :  { %v1638_v15 = vpop.permute.xlu1 %1637 }
0x1ca0   :  { %3089 = vmatmul.mubr.msk.f32.vlgmr.msra.gmra.mrb[10].mxu1 %vm170_vm4, %v1638_v15 }
0x1ca1   :  { %3244 = vmatpush3.bf16.msra.mxu1 %v3899_v20  ;;  %3110 = vmatprep.mubr.msk.f32.mxu1 %vm3535_vm0, %v3536_v1 }
0x1ca2   :  { %3245 = vmatprep.subr.bf16.mxu1 %v3534_v0 }
0x1ca5   :  { %3247 = vmatpush3.bf16.msra.mxu1 %v3914_v58 }
0x1ca6   :  { %3254 = vmatprep.subr.bf16.mxu1 %v3534_v0 }
0x1d73   :  { %v1707_v17 = vpop.f32.mrb[10].mxu1 }
0x1d74   :  { %v1729_v51 = vadd.f32 %v1707_v17, %v3968_v59  ;;  %v3090_v37 = vpop.f32.mrb[11].mxu1  ;;  %v1712_v36 = vrot.slane %v1707_v17, 7  ;;  %v1716_v24 = vadd.f32 %v1707_v17, %v3979_v29 }
0x1d76   :  { %1734 = vrot.lane.b32.xlu1 %v1729_v51, %s3537_s0  ;;  %v1731_v52 = vrot.slane %v1729_v51, 7  ;;  %v1715_v26 = vadd.f32 %v1712_v36, %v3981_v30  ;;  %v2848_v13 = vmul.f32 -1.442695, %v1716_v24 }
0x1d78   :  { %1732 = vrot.lane.b32.xlu0 %v1731_v52, %s3537_s0  ;;  %v2847_v18 = vmul.f32 -1.442695, %v1715_v26  ;;  %3398 = vpow2.f32 %v2848_v13 }
0x1d7a   :  { %3400 = vpow2.f32 %v2847_v18 }
0x1d82   :  { %v3399_v16 = vpop.eup %3398 }
0x1d83   :  { %v1724_v6 = vadd.f32 1.0, %v3399_v16 }
0x1d84   :  { %v3401_v19 = vpop.eup %3400 }
0x1d85   :  { %v1723_v8 = vadd.f32 1.0, %v3401_v19  ;;  %3402 = vrcp.f32 %v1724_v6 }
0x1d87   :  { %3404 = vrcp.f32 %v1723_v8 }
0x1d8f   :  { %v3403_v61 = vpop.eup %3402 }
0x1d91   :  { %v3405_v57 = vpop.eup %3404 }
0x1de8   :  { %v1735_v63 = vpop.permute.xlu1 %1734 }
0x1de9   :  { %v1739_v22 = vmul.f32 %v3403_v61, %v1735_v63 }
0x1dea   :  { %v1733_v23 = vpop.permute.xlu0 %1732 }
0x1deb   :  { %v1738_v5 = vmul.f32 %v3405_v57, %v1733_v23  ;;  %1744 = vrot.lane.b32.xlu1 %v1739_v22, %s3537_s0 }
0x1ded   :  { %1742 = vrot.lane.b32.xlu0 %v1738_v5, %s3537_s0 }
0x1e5d   :  { %v1745_v25 = vpop.permute.xlu1 %1744 }
0x1e5e   :  { %v1749_v14 = vadd.f32 %v1745_v25, %v3979_v29 }
0x1e5f   :  { %v1743_v27 = vpop.permute.xlu0 %1742 }
0x1e60   :  { %3406 = vtanh.f32 %v1749_v14  ;;  %v1748_v28 = vadd.f32 %v1743_v27, %v3981_v30 }
0x1e62   :  { %3408 = vtanh.f32 %v1748_v28 }
0x1e6a   :  { %v3407_v11 = vpop.eup %3406 }
0x1e6b   :  { %v1755_v31 = vrot.slane %v3407_v11, 1 }
0x1e6c   :  { %v3409_v32 = vpop.eup %3408 }
0x1e6d   :  { %v1759_v33 = vsub.f32 %v3993_v4, %v1755_v31  ;;  %v1754_v34 = vrot.slane %v3409_v32, 1 }
0x1e6f   :  { %v1763_v35 = vrot.slane %v1759_v33, 7  ;;  %v1758_v38 = vsub.f32 %v3995_v9, %v1754_v34 }
0x1e71   :  { %1766 = vrot.lane.b32.xlu1 %v1763_v35, %s3538_s3  ;;  %v1762_v39 = vrot.slane %v1758_v38, 7 }
0x1e73   :  { %1764 = vrot.lane.b32.xlu0 %v1762_v39, %s3538_s3 }
0x1ee3   :  { %v1767_v40 = vpop.permute.xlu1 %1766 }
0x1ee4   :  { %v1771_v41 = vmul.f32 %v3403_v61, %v1767_v40 }
0x1ee5   :  { %v1765_v42 = vpop.permute.xlu0 %1764 }
0x1ee6   :  { %v1770_v43 = vmul.f32 %v3405_v57, %v1765_v42  ;;  %1776 = vrot.lane.b32.xlu1 %v1771_v41, %s3539_s17 }
0x1ee8   :  { %1774 = vrot.lane.b32.xlu0 %v1770_v43, %s3539_s17 }
0x1f58   :  { %v1777_v44 = vpop.permute.xlu1 %1776 }
0x1f59   :  { %v4025_v47 = vadd.f32 %v3407_v11, %v1777_v44 }
0x1f5a   :  { %v1775_v45 = vpop.permute.xlu0 %1774 }
0x1f5b   :  { %v4023_v46 = vadd.f32 %v3409_v32, %v1775_v45 }
0x1f5d   :  { %v1784_v21 = vrot.slane %v4023_v46, 1 }
0x1f5f   :  { %v1785_v48 = vsel %vm313_vm3, %v4025_v47, %v1784_v21 }
0x1f60   :  { %1786 = vrot.lane.b32.xlu0 %v1785_v48, %s3537_s0 }
0x1fd2   :  { %v1787_v49 = vpop.permute.xlu0 %1786 }
0x1fd3   :  { %3100 = vmatmul.mubr.msk.f32.vlgmr.msra.gmra.mrb[12].mxu0 %vm170_vm4, %v1787_v49 }
0x1fd4   :  { %3250 = vmatpush3.bf16.msra.mxu0 %v3899_v20  ;;  %3121 = vmatprep.mubr.msk.f32.mxu0 %vm3535_vm0, %v3536_v1 }
0x1fd5   :  { %3251 = vmatprep.subr.bf16.mxu0 %v3534_v0 }
0x1fd8   :  { %3253 = vmatpush3.bf16.msra.mxu0 %v3914_v58 }
0x1fd9   :  { %3260 = vmatprep.subr.bf16.mxu0 %v3534_v0 }
0x20a6   :  { %v1856_v50 = vpop.f32.mrb[12].mxu0 }
0x20a7   :  { %v1879_v53 = vadd.f32 %v1856_v50, %v3968_v59  ;;  %v3101_v54 = vpop.f32.mrb[13].mxu0  ;;  %v1861_v60 = vrot.slane %v1856_v50, 6  ;;  %v1862_v62 = vrot.slane %v1856_v50, 7 }
0x20a9   :  { %v1882_v55 = vrot.slane %v1879_v53, 7  ;;  %v1881_v56 = vrot.slane %v1879_v53, 6  ;;  %v1865_v2 = vadd.f32 %v1861_v60, %v3981_v30  ;;  %v1866_v3 = vadd.f32 %v1862_v62, %v3979_v29 }
0x20ab   :  { %1885 = vrot.lane.b32.xlu0 %v1882_v55, %s3537_s0  ;;  %1883 = vrot.lane.b32.xlu1 %v1881_v56, %s3537_s0  ;;  %v2850_v7 = vmul.f32 -1.442695, %v1865_v2  ;;  %v2851_v10 = vmul.f32 -1.442695, %v1866_v3 }
0x20ad   :  { %3410 = vpow2.f32 %v2850_v7 }
0x20ae   :  { %3412 = vpow2.f32 %v2851_v10 }
0x20b7   :  { %v3411_v12 = vpop.eup %3410 }
0x20b8   :  { %v3413_v15 = vpop.eup %3412  ;;  %v1873_v17 = vadd.f32 1.0, %v3411_v12 }
0x20b9   :  { %v1874_v51 = vadd.f32 1.0, %v3413_v15 }
0x20ba   :  { %3414 = vrcp.f32 %v1873_v17 }
0x20bb   :  { %3416 = vrcp.f32 %v1874_v51 }
0x20c4   :  { %v3415_v37 = vpop.eup %3414 }
0x20c5   :  { %v3417_v52 = vpop.eup %3416 }
0x211d   :  { %v1886_v36 = vpop.permute.xlu0 %1885  ;;  %v1884_v24 = vpop.permute.xlu1 %1883 }
0x211e   :  { %v1890_v26 = vmul.f32 %v3417_v52, %v1886_v36  ;;  %v1889_v13 = vmul.f32 %v3415_v37, %v1884_v24 }
0x2120   :  { %1895 = vrot.lane.b32.xlu0 %v1890_v26, %s3537_s0  ;;  %1893 = vrot.lane.b32.xlu1 %v1889_v13, %s3537_s0 }
0x2192   :  { %v1896_v18 = vpop.permute.xlu0 %1895  ;;  %v1894_v16 = vpop.permute.xlu1 %1893 }
0x2193   :  { %v1900_v19 = vadd.f32 %v1896_v18, %v3979_v29  ;;  %v1899_v6 = vadd.f32 %v1894_v16, %v3981_v30 }
0x2195   :  { %3418 = vtanh.f32 %v1900_v19 }
0x2196   :  { %3420 = vtanh.f32 %v1899_v6 }
0x219f   :  { %v3419_v8 = vpop.eup %3418 }
0x21a0   :  { %v3421_v61 = vpop.eup %3420  ;;  %v1906_v63 = vrot.slane %v3419_v8, 1 }
0x21a1   :  { %v1905_v22 = vrot.slane %v3421_v61, 1 }
0x21a2   :  { %v1910_v57 = vsub.f32 %v4025_v47, %v1906_v63 }
0x21a3   :  { %v1909_v23 = vsub.f32 %v4023_v46, %v1905_v22 }
0x21a4   :  { %v1914_v5 = vrot.slane %v1910_v57, 7 }
0x21a5   :  { %v1913_v25 = vrot.slane %v1909_v23, 7 }
0x21a6   :  { %1917 = vrot.lane.b32.xlu0 %v1914_v5, %s3538_s3 }
0x21a7   :  { %1915 = vrot.lane.b32.xlu1 %v1913_v25, %s3538_s3 }
0x2218   :  { %v1918_v14 = vpop.permute.xlu0 %1917 }
0x2219   :  { %v1922_v27 = vmul.f32 %v3417_v52, %v1918_v14  ;;  %v1916_v28 = vpop.permute.xlu1 %1915 }
0x221a   :  { %v1921_v11 = vmul.f32 %v3415_v37, %v1916_v28 }
0x221b   :  { %1927 = vrot.lane.b32.xlu0 %v1922_v27, %s3539_s17 }
0x221c   :  { %1925 = vrot.lane.b32.xlu1 %v1921_v11, %s3539_s17 }
0x228d   :  { %v1928_v31 = vpop.permute.xlu0 %1927 }
0x228e   :  { %v4053_v32 = vadd.f32 %v3419_v8, %v1928_v31  ;;  %v1926_v33 = vpop.permute.xlu1 %1925 }
0x228f   :  { %v4055_v34 = vadd.f32 %v3421_v61, %v1926_v33 }
0x2290   :  { %v1936_v35 = vrot.slane %v4053_v32, 1 }
0x2291   :  { %v1935_v38 = vrot.slane %v4055_v34, 2 }
0x2293   :  { %v1937_v39 = vsel %vm313_vm3, %v1936_v35, %v1935_v38 }
0x2294   :  { %1938 = vrot.lane.b32.xlu1 %v1937_v39, %s3537_s0 }
0x2306   :  { %v1939_v40 = vpop.permute.xlu1 %1938 }
0x2307   :  { %3111 = vmatmul.mubr.msk.f32.vlgmr.msra.gmra.mrb[12].mxu1 %vm170_vm4, %v1939_v40 }
0x2308   :  { %3256 = vmatpush3.bf16.msra.mxu1 %v3899_v20  ;;  %3132 = vmatprep.mubr.msk.f32.mxu1 %vm3535_vm0, %v3536_v1 }
0x2309   :  { %3257 = vmatprep.subr.bf16.mxu1 %v3534_v0 }
0x230c   :  { %3259 = vmatpush3.bf16.msra.mxu1 %v3914_v58 }
0x230d   :  { %3266 = vmatprep.subr.bf16.mxu1 %v3534_v0 }
0x23da   :  { %v2008_v41 = vpop.f32.mrb[12].mxu1 }
0x23db   :  { %v2031_v42 = vadd.f32 %v2008_v41, %v3968_v59  ;;  %v3112_v43 = vpop.f32.mrb[13].mxu1  ;;  %v2013_v21 = vrot.slane %v2008_v41, 5  ;;  %v2014_v48 = vrot.slane %v2008_v41, 6 }
0x23dd   :  { %v2033_v44 = vrot.slane %v2031_v42, 5  ;;  %v2034_v45 = vrot.slane %v2031_v42, 6  ;;  %v2017_v49 = vadd.f32 %v2013_v21, %v3981_v30  ;;  %v2018_v50 = vadd.f32 %v2014_v48, %v3979_v29 }
0x23df   :  { %2037 = vrot.lane.b32.xlu1 %v2034_v45, %s3537_s0  ;;  %2035 = vrot.lane.b32.xlu0 %v2033_v44, %s3537_s0  ;;  %v2853_v53 = vmul.f32 -1.442695, %v2017_v49  ;;  %v2854_v54 = vmul.f32 -1.442695, %v2018_v50 }
0x23e1   :  { %3422 = vpow2.f32 %v2853_v53 }
0x23e2   :  { %3424 = vpow2.f32 %v2854_v54 }
0x23eb   :  { %v3423_v55 = vpop.eup %3422 }
0x23ec   :  { %v3425_v56 = vpop.eup %3424  ;;  %v2025_v60 = vadd.f32 1.0, %v3423_v55 }
0x23ed   :  { %v2026_v62 = vadd.f32 1.0, %v3425_v56 }
0x23ee   :  { %3426 = vrcp.f32 %v2025_v60 }
0x23ef   :  { %3428 = vrcp.f32 %v2026_v62 }
0x23f8   :  { %v3427_v2 = vpop.eup %3426 }
0x23f9   :  { %v3429_v3 = vpop.eup %3428 }
0x2451   :  { %v2038_v7 = vpop.permute.xlu1 %2037  ;;  %v2036_v10 = vpop.permute.xlu0 %2035 }
0x2452   :  { %v2042_v12 = vmul.f32 %v3429_v3, %v2038_v7  ;;  %v2041_v15 = vmul.f32 %v3427_v2, %v2036_v10 }
0x2454   :  { %2047 = vrot.lane.b32.xlu1 %v2042_v12, %s3537_s0  ;;  %2045 = vrot.lane.b32.xlu0 %v2041_v15, %s3537_s0 }
0x24c6   :  { %v2048_v17 = vpop.permute.xlu1 %2047  ;;  %v2046_v51 = vpop.permute.xlu0 %2045 }
0x24c7   :  { %v2052_v37 = vadd.f32 %v2048_v17, %v3979_v29  ;;  %v2051_v52 = vadd.f32 %v2046_v51, %v3981_v30 }
0x24c9   :  { %3430 = vtanh.f32 %v2052_v37 }
0x24ca   :  { %3432 = vtanh.f32 %v2051_v52 }
0x24d3   :  { %v3431_v36 = vpop.eup %3430 }
0x24d4   :  { %v3433_v24 = vpop.eup %3432  ;;  %v2058_v26 = vrot.slane %v3431_v36, 1 }
0x24d5   :  { %v2057_v13 = vrot.slane %v3433_v24, 1 }
0x24d6   :  { %v2062_v18 = vsub.f32 %v4053_v32, %v2058_v26 }
0x24d7   :  { %v2061_v16 = vsub.f32 %v4055_v34, %v2057_v13 }
0x24d8   :  { %v2066_v19 = vrot.slane %v2062_v18, 7 }
0x24d9   :  { %v2065_v6 = vrot.slane %v2061_v16, 7 }
0x24da   :  { %2069 = vrot.lane.b32.xlu1 %v2066_v19, %s3538_s3 }
0x24db   :  { %2067 = vrot.lane.b32.xlu0 %v2065_v6, %s3538_s3 }
0x254c   :  { %v2070_v8 = vpop.permute.xlu1 %2069 }
0x254d   :  { %v2074_v61 = vmul.f32 %v3429_v3, %v2070_v8  ;;  %v2068_v63 = vpop.permute.xlu0 %2067 }
0x254e   :  { %v2073_v22 = vmul.f32 %v3427_v2, %v2068_v63 }
0x254f   :  { %2079 = vrot.lane.b32.xlu1 %v2074_v61, %s3539_s17 }
0x2550   :  { %2077 = vrot.lane.b32.xlu0 %v2073_v22, %s3539_s17 }
0x25c1   :  { %v2080_v57 = vpop.permute.xlu1 %2079 }
0x25c2   :  { %v4083_v23 = vadd.f32 %v3431_v36, %v2080_v57  ;;  %v2078_v5 = vpop.permute.xlu0 %2077 }
0x25c3   :  { %v4085_v25 = vadd.f32 %v3433_v24, %v2078_v5 }
0x25c4   :  { %v2088_v14 = vrot.slane %v4083_v23, 2 }
0x25c5   :  { %v2087_v27 = vrot.slane %v4085_v25, 3 }
0x25c7   :  { %v2089_v28 = vsel %vm313_vm3, %v2088_v14, %v2087_v27 }
0x25c8   :  { %2090 = vrot.lane.b32.xlu0 %v2089_v28, %s3537_s0 }
0x263a   :  { %v2091_v11 = vpop.permute.xlu0 %2090 }
0x263b   :  { %3122 = vmatmul.mubr.msk.f32.vlgmr.msra.gmra.mrb[14].mxu0 %vm170_vm4, %v2091_v11 }
0x263c   :  { %3262 = vmatpush3.bf16.msra.mxu0 %v3899_v20  ;;  %3143 = vmatprep.mubr.msk.f32.mxu0 %vm3535_vm0, %v3536_v1 }
0x263d   :  { %3263 = vmatprep.subr.bf16.mxu0 %v3534_v0 }
0x2640   :  { %3265 = vmatpush3.bf16.msra.mxu0 %v3914_v58 }
0x270e   :  { %v2160_v31 = vpop.f32.mrb[14].mxu0 }
0x270f   :  { %v2183_v33 = vadd.f32 %v2160_v31, %v3968_v59  ;;  %v3123_v35 = vpop.f32.mrb[15].mxu0  ;;  %v2165_v40 = vrot.slane %v2160_v31, 4  ;;  %v2166_v41 = vrot.slane %v2160_v31, 5 }
0x2711   :  { %v2185_v38 = vrot.slane %v2183_v33, 4  ;;  %v2186_v39 = vrot.slane %v2183_v33, 5  ;;  %v2169_v42 = vadd.f32 %v2165_v40, %v3981_v30  ;;  %v2170_v43 = vadd.f32 %v2166_v41, %v3979_v29 }
0x2713   :  { %2189 = vrot.lane.b32.xlu0 %v2186_v39, %s3537_s0  ;;  %2187 = vrot.lane.b32.xlu1 %v2185_v38, %s3537_s0  ;;  %v2856_v44 = vmul.f32 -1.442695, %v2169_v42  ;;  %v2857_v45 = vmul.f32 -1.442695, %v2170_v43 }
0x2715   :  { %3434 = vpow2.f32 %v2856_v44 }
0x2716   :  { %3436 = vpow2.f32 %v2857_v45 }
0x271f   :  { %v3435_v21 = vpop.eup %3434 }
0x2720   :  { %v3437_v48 = vpop.eup %3436  ;;  %v2177_v49 = vadd.f32 1.0, %v3435_v21 }
0x2721   :  { %v2178_v50 = vadd.f32 1.0, %v3437_v48 }
0x2722   :  { %3438 = vrcp.f32 %v2177_v49 }
0x2723   :  { %3440 = vrcp.f32 %v2178_v50 }
0x272c   :  { %v3439_v53 = vpop.eup %3438 }
0x272d   :  { %v3441_v54 = vpop.eup %3440 }
0x2785   :  { %v2190_v55 = vpop.permute.xlu0 %2189  ;;  %v2188_v56 = vpop.permute.xlu1 %2187 }
0x2786   :  { %v2194_v60 = vmul.f32 %v3441_v54, %v2190_v55  ;;  %v2193_v62 = vmul.f32 %v3439_v53, %v2188_v56 }
0x2788   :  { %2199 = vrot.lane.b32.xlu0 %v2194_v60, %s3537_s0  ;;  %2197 = vrot.lane.b32.xlu1 %v2193_v62, %s3537_s0 }
0x27fa   :  { %v2200_v2 = vpop.permute.xlu0 %2199  ;;  %v2198_v3 = vpop.permute.xlu1 %2197 }
0x27fb   :  { %v2204_v7 = vadd.f32 %v2200_v2, %v3979_v29  ;;  %v2203_v10 = vadd.f32 %v2198_v3, %v3981_v30 }
0x27fd   :  { %3442 = vtanh.f32 %v2204_v7 }
0x27fe   :  { %3444 = vtanh.f32 %v2203_v10 }
0x2807   :  { %v3443_v12 = vpop.eup %3442 }
0x2808   :  { %v3445_v15 = vpop.eup %3444  ;;  %v2210_v17 = vrot.slane %v3443_v12, 1 }
0x2809   :  { %v2209_v51 = vrot.slane %v3445_v15, 1 }
0x280a   :  { %v2214_v37 = vsub.f32 %v4083_v23, %v2210_v17 }
0x280b   :  { %v2213_v52 = vsub.f32 %v4085_v25, %v2209_v51 }
0x280c   :  { %v2218_v36 = vrot.slane %v2214_v37, 7 }
0x280d   :  { %v2217_v24 = vrot.slane %v2213_v52, 7 }
0x280e   :  { %2221 = vrot.lane.b32.xlu0 %v2218_v36, %s3538_s3 }
0x280f   :  { %2219 = vrot.lane.b32.xlu1 %v2217_v24, %s3538_s3 }
0x2880   :  { %v2222_v26 = vpop.permute.xlu0 %2221 }
0x2881   :  { %v2226_v13 = vmul.f32 %v3441_v54, %v2222_v26  ;;  %v2220_v18 = vpop.permute.xlu1 %2219 }
0x2882   :  { %v2225_v16 = vmul.f32 %v3439_v53, %v2220_v18 }
0x2883   :  { %2231 = vrot.lane.b32.xlu0 %v2226_v13, %s3539_s17 }
0x2884   :  { %2229 = vrot.lane.b32.xlu1 %v2225_v16, %s3539_s17 }
0x28f5   :  { %v2232_v19 = vpop.permute.xlu0 %2231 }
0x28f6   :  { %v4112_v6 = vadd.f32 %v3443_v12, %v2232_v19  ;;  %v2230_v8 = vpop.permute.xlu1 %2229 }
0x28f7   :  { %v4114_v61 = vadd.f32 %v3445_v15, %v2230_v8 }
0x28f8   :  { %v2240_v63 = vrot.slane %v4112_v6, 3 }
0x28f9   :  { %v2239_v22 = vrot.slane %v4114_v61, 4 }
0x28fb   :  { %v2241_v57 = vsel %vm313_vm3, %v2240_v63, %v2239_v22 }
0x28fc   :  { %2242 = vrot.lane.b32.xlu1 %v2241_v57, %s3537_s0 }
0x296e   :  { %v2243_v5 = vpop.permute.xlu1 %2242 }
0x296f   :  { %3133 = vmatmul.mubr.msk.f32.vlgmr.msra.gmra.mrb[14].mxu1 %vm170_vm4, %v2243_v5 }
0x2970   :  { %3268 = vmatpush3.bf16.msra.mxu1 %v3899_v20  ;;  %3154 = vmatprep.mubr.msk.f32.mxu1 %vm3535_vm0, %v3536_v1 }
0x2971   :  { %3269 = vmatprep.subr.bf16.mxu1 %v3534_v0 }
0x2974   :  { %3271 = vmatpush3.bf16.msra.mxu1 %v3914_v58 }
0x2a42   :  { %v2312_v14 = vpop.f32.mrb[14].mxu1 }
0x2a43   :  { %v2335_v27 = vadd.f32 %v2312_v14, %v3968_v59  ;;  %v3134_v28 = vpop.f32.mrb[15].mxu1  ;;  %v2317_v33 = vrot.slane %v2312_v14, 3  ;;  %v2318_v35 = vrot.slane %v2312_v14, 4 }
0x2a45   :  { %v2337_v11 = vrot.slane %v2335_v27, 3  ;;  %v2338_v31 = vrot.slane %v2335_v27, 4  ;;  %v2321_v20 = vadd.f32 %v2317_v33, %v3981_v30  ;;  %v2322_v1 = vadd.f32 %v2318_v35, %v3979_v29 }
0x2a47   :  { %2341 = vrot.lane.b32.xlu1 %v2338_v31, %s3537_s0  ;;  %2339 = vrot.lane.b32.xlu0 %v2337_v11, %s3537_s0  ;;  %v2859_v38 = vmul.f32 -1.442695, %v2321_v20  ;;  %v2860_v0 = vmul.f32 -1.442695, %v2322_v1 }
0x2a49   :  { %3446 = vpow2.f32 %v2859_v38 }
0x2a4a   :  { %3448 = vpow2.f32 %v2860_v0 }
0x2a53   :  { %v3447_v58 = vpop.eup %3446 }
0x2a54   :  { %v3449_v39 = vpop.eup %3448  ;;  %v2329_v40 = vadd.f32 1.0, %v3447_v58 }
0x2a55   :  { %v2330_v41 = vadd.f32 1.0, %v3449_v39 }
0x2a56   :  { %3450 = vrcp.f32 %v2329_v40 }
0x2a57   :  { %3452 = vrcp.f32 %v2330_v41 }
0x2a60   :  { %v3451_v42 = vpop.eup %3450 }
0x2a61   :  { %v3453_v43 = vpop.eup %3452 }
0x2ab9   :  { %v2342_v44 = vpop.permute.xlu1 %2341  ;;  %v2340_v45 = vpop.permute.xlu0 %2339 }
0x2aba   :  { %v2346_v21 = vmul.f32 %v3453_v43, %v2342_v44  ;;  %v2345_v48 = vmul.f32 %v3451_v42, %v2340_v45 }
0x2abc   :  { %2351 = vrot.lane.b32.xlu1 %v2346_v21, %s3537_s0  ;;  %2349 = vrot.lane.b32.xlu0 %v2345_v48, %s3537_s0 }
0x2b2e   :  { %v2352_v49 = vpop.permute.xlu1 %2351  ;;  %v2350_v50 = vpop.permute.xlu0 %2349 }
0x2b2f   :  { %v2356_v53 = vadd.f32 %v2352_v49, %v3979_v29  ;;  %v2355_v54 = vadd.f32 %v2350_v50, %v3981_v30 }
0x2b31   :  { %3454 = vtanh.f32 %v2356_v53 }
0x2b32   :  { %3456 = vtanh.f32 %v2355_v54 }
0x2b3b   :  { %v3455_v55 = vpop.eup %3454 }
0x2b3c   :  { %v3457_v56 = vpop.eup %3456  ;;  %v2362_v60 = vrot.slane %v3455_v55, 1 }
0x2b3d   :  { %v2361_v62 = vrot.slane %v3457_v56, 1 }
0x2b3e   :  { %v2366_v2 = vsub.f32 %v4112_v6, %v2362_v60 }
0x2b3f   :  { %v2365_v3 = vsub.f32 %v4114_v61, %v2361_v62 }
0x2b40   :  { %v2370_v7 = vrot.slane %v2366_v2, 7 }
0x2b41   :  { %v2369_v10 = vrot.slane %v2365_v3, 7 }
0x2b42   :  { %2373 = vrot.lane.b32.xlu1 %v2370_v7, %s3538_s3 }
0x2b43   :  { %2371 = vrot.lane.b32.xlu0 %v2369_v10, %s3538_s3 }
0x2bb4   :  { %v2374_v12 = vpop.permute.xlu1 %2373 }
0x2bb5   :  { %v2378_v15 = vmul.f32 %v3453_v43, %v2374_v12  ;;  %v2372_v17 = vpop.permute.xlu0 %2371 }
0x2bb6   :  { %v2377_v51 = vmul.f32 %v3451_v42, %v2372_v17 }
0x2bb7   :  { %2383 = vrot.lane.b32.xlu1 %v2378_v15, %s3539_s17 }
0x2bb8   :  { %2381 = vrot.lane.b32.xlu0 %v2377_v51, %s3539_s17 }
0x2c29   :  { %v2384_v37 = vpop.permute.xlu1 %2383 }
0x2c2a   :  { %v4141_v52 = vadd.f32 %v3455_v55, %v2384_v37  ;;  %v2382_v36 = vpop.permute.xlu0 %2381 }
0x2c2b   :  { %v4143_v24 = vadd.f32 %v3457_v56, %v2382_v36 }
0x2c2c   :  { %v2392_v26 = vrot.slane %v4141_v52, 4 }
0x2c2d   :  { %v2391_v13 = vrot.slane %v4143_v24, 5 }
0x2c2f   :  { %v2393_v18 = vsel %vm313_vm3, %v2392_v26, %v2391_v13 }
0x2c30   :  { %2394 = vrot.lane.b32.xlu0 %v2393_v18, %s3537_s0 }
0x2ca2   :  { %v2395_v16 = vpop.permute.xlu0 %2394 }
0x2ca3   :  { %3144 = vmatmul.mubr.msk.f32.vlgmr.msra.gmra.mrb[16].mxu0 %vm170_vm4, %v2395_v16 }
0x2d76   :  { %v2464_v19 = vpop.f32.mrb[16].mxu0 }
0x2d77   :  { %v2487_v8 = vadd.f32 %v2464_v19, %v3968_v59  ;;  %v3145_v63 = vpop.f32.mrb[17].mxu0  ;;  %v2469_v5 = vrot.slane %v2464_v19, 2  ;;  %v2470_v14 = vrot.slane %v2464_v19, 3 }
0x2d79   :  { %v2489_v22 = vrot.slane %v2487_v8, 2  ;;  %v2490_v57 = vrot.slane %v2487_v8, 3  ;;  %v2473_v27 = vadd.f32 %v2469_v5, %v3981_v30  ;;  %v2474_v28 = vadd.f32 %v2470_v14, %v3979_v29 }
0x2d7b   :  { %2493 = vrot.lane.b32.xlu0 %v2490_v57, %s3537_s0  ;;  %2491 = vrot.lane.b32.xlu1 %v2489_v22, %s3537_s0  ;;  %v2862_v11 = vmul.f32 -1.442695, %v2473_v27  ;;  %v2863_v31 = vmul.f32 -1.442695, %v2474_v28 }
0x2d7d   :  { %3458 = vpow2.f32 %v2862_v11 }
0x2d7e   :  { %3460 = vpow2.f32 %v2863_v31 }
0x2d87   :  { %v3459_v33 = vpop.eup %3458 }
0x2d88   :  { %v3461_v35 = vpop.eup %3460  ;;  %v2481_v20 = vadd.f32 1.0, %v3459_v33 }
0x2d89   :  { %v2482_v1 = vadd.f32 1.0, %v3461_v35 }
0x2d8a   :  { %3462 = vrcp.f32 %v2481_v20 }
0x2d8b   :  { %3464 = vrcp.f32 %v2482_v1 }
0x2d94   :  { %v3463_v38 = vpop.eup %3462 }
0x2d95   :  { %v3465_v0 = vpop.eup %3464 }
0x2ded   :  { %v2494_v58 = vpop.permute.xlu0 %2493  ;;  %v2492_v39 = vpop.permute.xlu1 %2491 }
0x2dee   :  { %v2498_v40 = vmul.f32 %v3465_v0, %v2494_v58  ;;  %v2497_v41 = vmul.f32 %v3463_v38, %v2492_v39 }
0x2df0   :  { %2503 = vrot.lane.b32.xlu0 %v2498_v40, %s3537_s0  ;;  %2501 = vrot.lane.b32.xlu1 %v2497_v41, %s3537_s0 }
0x2e62   :  { %v2504_v42 = vpop.permute.xlu0 %2503  ;;  %v2502_v43 = vpop.permute.xlu1 %2501 }
0x2e63   :  { %v2508_v44 = vadd.f32 %v2504_v42, %v3979_v29  ;;  %v2507_v45 = vadd.f32 %v2502_v43, %v3981_v30 }
0x2e65   :  { %3466 = vtanh.f32 %v2508_v44 }
0x2e66   :  { %3468 = vtanh.f32 %v2507_v45 }
0x2e6f   :  { %v3467_v21 = vpop.eup %3466 }
0x2e70   :  { %v3469_v48 = vpop.eup %3468  ;;  %v2514_v49 = vrot.slane %v3467_v21, 1 }
0x2e71   :  { %v2513_v50 = vrot.slane %v3469_v48, 1 }
0x2e72   :  { %v2518_v53 = vsub.f32 %v4141_v52, %v2514_v49 }
0x2e73   :  { %v2517_v54 = vsub.f32 %v4143_v24, %v2513_v50  ;;  %v2709_v50 = vld [vmem:[%s4251_s9 + $0x10] sm:$0xff] }
0x2e74   :  { %v2522_v55 = vrot.slane %v2518_v53, 7 }
0x2e75   :  { %v2521_v56 = vrot.slane %v2517_v54, 7  ;;  %v2710_v54 = vld [vmem:[%s4251_s9 + $0x18] sm:$0xff] }
0x2e76   :  { %2525 = vrot.lane.b32.xlu0 %v2522_v55, %s3538_s3  ;;  %v3276_v55 = vpack.c.bf16 %v2710_v54, %v2709_v50 }
0x2e77   :  { %2523 = vrot.lane.b32.xlu1 %v2521_v56, %s3538_s3 }
0x2ee8   :  { %v2526_v60 = vpop.permute.xlu0 %2525 }
0x2ee9   :  { %v2530_v62 = vmul.f32 %v3465_v0, %v2526_v60  ;;  %v2524_v2 = vpop.permute.xlu1 %2523 }
0x2eea   :  { %v2529_v3 = vmul.f32 %v3463_v38, %v2524_v2 }
0x2eeb   :  { %2535 = vrot.lane.b32.xlu0 %v2530_v62, %s3539_s17 }
0x2eec   :  { %2533 = vrot.lane.b32.xlu1 %v2529_v3, %s3539_s17  ;;  %v2694_v3 = vsel %vm1371_vm5, %v3993_v4, %v4025_v47 }
0x2f5d   :  { %v2536_v7 = vpop.permute.xlu0 %2535 }
0x2f5e   :  { %v4165_v10 = vadd.f32 %v3467_v21, %v2536_v7  ;;  %v2534_v12 = vpop.permute.xlu1 %2533  ;;  %v2693_v7 = vsel %vm1371_vm5, %v3995_v9, %v4023_v46 }
0x2f5f   :  { %v4167_v15 = vadd.f32 %v3469_v48, %v2534_v12  ;;  %v2696_v12 = vsel %vm1374_vm6, %v2694_v3, %v4053_v32 }
0x2f60   :  { %v2544_v17 = vrot.slane %v4165_v10, 5 }
0x2f61   :  { %v2543_v51 = vrot.slane %v4167_v15, 6 }
0x2f63   :  { %v2545_v37 = vsel %vm313_vm3, %v2544_v17, %v2543_v51  ;;  %v2695_v17 = vsel %vm1374_vm6, %v2693_v7, %v4055_v34  ;;  %v2698_v51 = vsel %vm1377_vm7, %v2696_v12, %v4083_v23 }
0x2f64   :  { %2546 = vrot.lane.b32.xlu1 %v2545_v37, %s3537_s0  ;;  %v2697_v37 = vsel %vm1377_vm7, %v2695_v17, %v4085_v25 }
0x2f65   :  { %v2699_v47 = vsel %vm86_vm1, %v2697_v37, %v4114_v61 }
0x2f66   :  { %v2701_v34 = vsel %vm1382_vm8, %v2699_v47, %v4143_v24  ;;  %v2867_v24 = vld [vmem:[%s4252_s10] ss:$0 sm:$0xff] }
0x2f67   :  { %v2703_v25 = vsel %vm1385_vm9, %v2701_v34, %v4167_v15 }
0x2fd6   :  { %v2547_v36 = vpop.permute.xlu1 %2546 }
0x2fd7   :  { %3155 = vmatmul.mubr.msk.f32.vlgmr.msra.gmra.mrb[16].mxu1 %vm170_vm4, %v2547_v36  ;;  %v2700_v36 = vsel %vm86_vm1, %v2698_v51, %v4112_v6 }
0x2fd8   :  { %v2702_v9 = vsel %vm1382_vm8, %v2700_v36, %v4141_v52 }
0x2fd9   :  { %v2704_v23 = vsel %vm1385_vm9, %v2702_v9, %v4165_v10 }
0x30aa   :  { %v2616_v26 = vpop.f32.mrb[16].mxu1 }
0x30ab   :  { %v2639_v13 = vadd.f32 %v2616_v26, %v3968_v59  ;;  %v3156_v18 = vpop.f32.mrb[17].mxu1  ;;  %v2621_v8 = vrot.slane %v2616_v26, 1  ;;  %v2622_v63 = vrot.slane %v2616_v26, 2 }
0x30ad   :  { %v2641_v16 = vrot.slane %v2639_v13, 1  ;;  %v2642_v19 = vrot.slane %v2639_v13, 2  ;;  %v2625_v22 = vadd.f32 %v2621_v8, %v3981_v30  ;;  %v2626_v57 = vadd.f32 %v2622_v63, %v3979_v29 }
0x30af   :  { %2645 = vrot.lane.b32.xlu1 %v2642_v19, %s3537_s0  ;;  %2643 = vrot.lane.b32.xlu0 %v2641_v16, %s3537_s0  ;;  %v2865_v5 = vmul.f32 -1.442695, %v2625_v22  ;;  %v2866_v14 = vmul.f32 -1.442695, %v2626_v57 }
0x30b1   :  { %3470 = vpow2.f32 %v2865_v5 }
0x30b2   :  { %3472 = vpow2.f32 %v2866_v14 }
0x30bb   :  { %v3471_v27 = vpop.eup %3470 }
0x30bc   :  { %v3473_v28 = vpop.eup %3472  ;;  %v2633_v59 = vadd.f32 1.0, %v3471_v27 }
0x30bd   :  { %v2634_v11 = vadd.f32 1.0, %v3473_v28 }
0x30be   :  { %3474 = vrcp.f32 %v2633_v59 }
0x30bf   :  { %3476 = vrcp.f32 %v2634_v11 }
0x30c8   :  { %v3475_v31 = vpop.eup %3474 }
0x30c9   :  { %v3477_v33 = vpop.eup %3476 }
0x3121   :  { %v2646_v35 = vpop.permute.xlu1 %2645  ;;  %v2644_v20 = vpop.permute.xlu0 %2643 }
0x3122   :  { %v2650_v1 = vmul.f32 %v3477_v33, %v2646_v35  ;;  %v2649_v38 = vmul.f32 %v3475_v31, %v2644_v20 }
0x3124   :  { %2655 = vrot.lane.b32.xlu1 %v2650_v1, %s3537_s0  ;;  %2653 = vrot.lane.b32.xlu0 %v2649_v38, %s3537_s0 }
0x3196   :  { %v2656_v0 = vpop.permute.xlu1 %2655  ;;  %v2654_v58 = vpop.permute.xlu0 %2653 }
0x3197   :  { %v2660_v39 = vadd.f32 %v2656_v0, %v3979_v29  ;;  %v2659_v40 = vadd.f32 %v2654_v58, %v3981_v30  ;;  %v2707_v29 = vld [vmem:[%s4251_s9] sm:$0xff]  ;;  %v2708_v30 = vld [vmem:[%s4251_s9 + $0x8] sm:$0xff] }
0x3198   :  { %v3272_v53 = vpack.c.bf16 %v2708_v30, %v2707_v29 }
0x3199   :  { %3478 = vtanh.f32 %v2660_v39 }
0x319a   :  { %3480 = vtanh.f32 %v2659_v40  ;;  %3273 = vmatprep.subr.bf16.mxu0 %v3272_v53 }
0x319b   :  { %3275 = vmatpush3.bf16.msra.mxu0 %v3272_v53 }
0x319c   :  { %3277 = vmatprep.subr.bf16.mxu0 %v3276_v55 }
0x319f   :  { %3279 = vmatpush3.bf16.msra.mxu0 %v3276_v55 }
0x31a3   :  { %v3479_v41 = vpop.eup %3478 }
0x31a4   :  { %v3481_v42 = vpop.eup %3480  ;;  %v2666_v43 = vrot.slane %v3479_v41, 1 }
0x31a5   :  { %v2665_v44 = vrot.slane %v3481_v42, 1 }
0x31a6   :  { %v2670_v45 = vsub.f32 %v4165_v10, %v2666_v43 }
0x31a7   :  { %v2669_v21 = vsub.f32 %v4167_v15, %v2665_v44 }
0x31a8   :  { %v2674_v48 = vrot.slane %v2670_v45, 7 }
0x31a9   :  { %v2673_v49 = vrot.slane %v2669_v21, 7 }
0x31aa   :  { %2677 = vrot.lane.b32.xlu1 %v2674_v48, %s3538_s3 }
0x31ab   :  { %2675 = vrot.lane.b32.xlu0 %v2673_v49, %s3538_s3 }
0x321c   :  { %v2678_v56 = vpop.permute.xlu1 %2677 }
0x321d   :  { %v2682_v60 = vmul.f32 %v3477_v33, %v2678_v56  ;;  %v2676_v62 = vpop.permute.xlu0 %2675 }
0x321e   :  { %v2681_v2 = vmul.f32 %v3475_v31, %v2676_v62 }
0x321f   :  { %2687 = vrot.lane.b32.xlu1 %v2682_v60, %s3539_s17 }
0x3220   :  { %2685 = vrot.lane.b32.xlu0 %v2681_v2, %s3539_s17 }
0x3291   :  { %v2688_v4 = vpop.permute.xlu1 %2687 }
0x3292   :  { %v2692_v46 = vadd.f32 %v3479_v41, %v2688_v4  ;;  %v2686_v32 = vpop.permute.xlu0 %2685 }
0x3293   :  { %v2691_v26 = vadd.f32 %v3481_v42, %v2686_v32 }
0x3294   :  { %v2706_v6 = vsel %vm1388_vm10, %v2704_v23, %v2692_v46 }
0x3295   :  { %2722 = vrot.lane.b32.xlu1 %v2706_v6, %s3537_s0  ;;  %v2705_v61 = vsel %vm1388_vm10, %v2703_v25, %v2691_v26 }
0x3296   :  { %2720 = vrot.lane.b32.xlu0 %v2705_v61, %s3537_s0 }
0x3307   :  { %v2723_v52 = vpop.permute.xlu1 %2722 }
0x3308   :  { %v2721_v13 = vpop.permute.xlu0 %2720 }
0x3309   :  { %3165 = vmatprep.mubr.msk.f32.mxu0 %vm170_vm4, %v2721_v13 }
0x330a   :  { %3166 = vmatmul.mubr.msk.f32.vlgmr.msra.gmra.mrb[18].mxu0 %vm170_vm4, %v2723_v52 }
0x33dd   :  { %v3167_v10 = vpop.f32.mrb[18].mxu0 }
0x33de   :  { %v2800_v15 = vadd.f32 %v3167_v10, %v2867_v24  ;;  %v2794_v18 = vpop.f32.mrb[19].mxu0 }
0x33df   :  { %v2795_v16 = vadd.f32 %v2867_v24, %v2794_v18 }
0x33e0   :  { %2805 = vst.msk [vmem:[%s4253_s11 + $0x8] sm:$0xff] %vm2803_vm11, %v2800_v15 }
0x33e1   :  { %2804 = vst.msk [vmem:[%s4253_s11] sm:$0xff] %vm2803_vm11, %v2795_v16 }
0x33e2   :  { %2810 = vsyncpa [#allocation3], 1 }
0x33e3   :  { %2811 = vsyncpa [#allocation5], 1 }

</bundles_post_ra>
